<compile_context>
chip_gen: v6e
topology: v6e:2x2x1
jax: 0.10.0
libtpu: 0.0.40
codegen_flags: <defaults>
</compile_context>

<pallas_src>
import functools

import jax
import jax.numpy as jnp
from jax import lax
from jax.experimental import pallas as pl
from jax.experimental.pallas import tpu as pltpu


# ----------------------------------------------------------------------------
# Shared in-kernel helpers
# ----------------------------------------------------------------------------
def _layer_norm(x, g, b, eps=1e-5):
    mu = jnp.mean(x, axis=-1, keepdims=True)
    var = jnp.mean((x - mu) ** 2, axis=-1, keepdims=True)
    return (x - mu) * lax.rsqrt(var + eps) * g + b


# ----------------------------------------------------------------------------
# Kernel A: tiled matmul + bias + (ReLU)   [conv1 stem as im2col matmul]
# ----------------------------------------------------------------------------
def _matmul_bias_act_kernel(x_ref, w_ref, b_ref, o_ref, *, act):
    y = jnp.dot(x_ref[...].astype(jnp.bfloat16),
                w_ref[...].astype(jnp.bfloat16),
                preferred_element_type=jnp.float32)
    y = y + b_ref[...]
    if act == "relu":
        y = jnp.maximum(y, 0.0)
    o_ref[...] = y.astype(o_ref.dtype)


def matmul_bias_act(x, w, b, act="none", tile_m=256):
    """y = act(x @ w + b); x:(M,K), w:(K,N), b:(N,); tiled over M."""
    M, K = x.shape
    N = w.shape[1]
    if M <= tile_m:
        tile_m = M                      # single full block (always legal)
    Mp = ((M + tile_m - 1) // tile_m) * tile_m
    if Mp != M:
        x = jnp.pad(x, ((0, Mp - M), (0, 0)))
    out = pl.pallas_call(
        functools.partial(_matmul_bias_act_kernel, act=act),
        out_shape=jax.ShapeDtypeStruct((Mp, N), jnp.float32),
        grid=(Mp // tile_m,),
        in_specs=[
            pl.BlockSpec((tile_m, K), lambda i: (i, 0)),
            pl.BlockSpec((K, N), lambda i: (0, 0)),       # weights resident
            pl.BlockSpec((1, N), lambda i: (0, 0)),
        ],
        out_specs=pl.BlockSpec((tile_m, N), lambda i: (i, 0)),
        compiler_params=pltpu.CompilerParams(dimension_semantics=("parallel",)),
    )(x, w, b.reshape(1, N))
    return out[:M] if Mp != M else out


# ----------------------------------------------------------------------------
# Kernel B: fused patch-embed + full transformer stack + final LN + to_latent
# ----------------------------------------------------------------------------
def _vit_body_kernel(hp_ref, c2w_ref, c2b_ref, pos_ref,
                     ln1g_ref, ln1b_ref, wqkv_ref, wo_ref, bo_ref,
                     ln2g_ref, ln2b_ref, w1_ref, b1_ref, w2_ref, b2_ref,
                     ng_ref, nb_ref, wl_ref, bl_ref,
                     o_ref, tok_ref, *, heads, dim_head):
    d = pl.program_id(1)
    inner = heads * dim_head
    bf16 = jnp.bfloat16
    f32 = jnp.float32

    # First depth step also performs the patch-embedding conv (+ pos embed).
    @pl.when(d == 0)
    def _():
        emb = jnp.dot(hp_ref[0].astype(bf16), c2w_ref[...].astype(bf16),
                      preferred_element_type=f32)
        tok_ref[...] = emb + c2b_ref[...] + pos_ref[...]

    x = tok_ref[...]                                     # (Np, D) f32, resident

    # --- PreNorm + SimpleAttention + residual (1/sqrt(dh) folded into wqkv Q) ---
    h = _layer_norm(x, ln1g_ref[0], ln1b_ref[0])
    qkv = jnp.dot(h.astype(bf16), wqkv_ref[0].astype(bf16),
                  preferred_element_type=f32)            # (Np, 3*inner)
    outs = []
    for hi in range(heads):                              # static unroll over heads
        q = qkv[:, hi * dim_head:(hi + 1) * dim_head].astype(bf16)
        k = qkv[:, inner + hi * dim_head: inner + (hi + 1) * dim_head].astype(bf16)
        v = qkv[:, 2 * inner + hi * dim_head: 2 * inner + (hi + 1) * dim_head].astype(bf16)
        s = lax.dot_general(q, k, (((1,), (1,)), ((), ())),
                            preferred_element_type=f32)  # q @ k.T w/o transpose
        s = s - jnp.max(s, axis=-1, keepdims=True)
        e = jnp.exp(s)
        p = e * pl.reciprocal(jnp.sum(e, axis=-1, keepdims=True), approx=True)
        outs.append(jnp.dot(p.astype(bf16), v, preferred_element_type=f32))
    cat = jnp.concatenate(outs, axis=-1) if heads > 1 else outs[0]   # (Np, inner)
    attn = jnp.dot(cat.astype(bf16), wo_ref[0].astype(bf16),
                   preferred_element_type=f32) + bo_ref[0]
    x = x + attn

    # --- PreNorm + FeedForward(tanh) + residual ---
    h2 = _layer_norm(x, ln2g_ref[0], ln2b_ref[0])
    ff = jnp.tanh(jnp.dot(h2.astype(bf16), w1_ref[0].astype(bf16),
                          preferred_element_type=f32) + b1_ref[0])
    ff = jnp.dot(ff.astype(bf16), w2_ref[0].astype(bf16),
                 preferred_element_type=f32) + b2_ref[0]
    x = x + ff
    tok_ref[...] = x

    # --- final LayerNorm + to_latent fused into the last depth step ---
    @pl.when(d == pl.num_programs(1) - 1)
    def _():
        hf = _layer_norm(x, ng_ref[...], nb_ref[...])
        y = jnp.dot(hf.astype(bf16), wl_ref[...].astype(bf16),
                    preferred_element_type=f32) + bl_ref[...]
        o_ref[0] = y.astype(o_ref.dtype)


def _stack_layer_params(layers, inner, scale):
    stk = lambda n: jnp.stack([lp[n] for lp in layers])                     # (depth, r, c)
    stkv = lambda n: jnp.stack([lp[n].reshape(1, -1) for lp in layers])     # (depth, 1, c)
    wqkv = stk("wqkv")
    wqkv = wqkv.at[:, :, :inner].multiply(scale)    # fold attention scale into Q cols
    return dict(
        ln1g=stkv("ln1_g"), ln1b=stkv("ln1_b"),
        wqkv=wqkv, wo=stk("wo"), bo=stkv("bo"),
        ln2g=stkv("ln2_g"), ln2b=stkv("ln2_b"),
        w1=stk("w1"), b1=stkv("b1"), w2=stk("w2"), b2=stkv("b2"),
    )


def vit_body(hp, params, *, heads, dim_head):
    """hp: (B, Np, patch*patch*dim) patchified conv1 activation -> (B, Np, latent)."""
    B, Np, Kp2 = hp.shape
    D = params["conv2_w"].shape[1]
    L = params["wlat"].shape[1]
    depth = len(params["layers"])
    inner = heads * dim_head
    mlp = params["layers"][0]["w1"].shape[1]
    sp = _stack_layer_params(params["layers"], inner, 1.0 / (dim_head ** 0.5))

    def cst(shape):                       # resident (constant) operand
        n = len(shape)
        return pl.BlockSpec(shape, lambda b, d: (0,) * n)

    def per_layer(tail):                  # stacked (depth, *tail), indexed by d
        n = len(tail)
        return pl.BlockSpec((1,) + tail, lambda b, d: (d,) + (0,) * n)

    return pl.pallas_call(
        functools.partial(_vit_body_kernel, heads=heads, dim_head=dim_head),
        out_shape=jax.ShapeDtypeStruct((B, Np, L), jnp.float32),
        grid=(B, depth),
        in_specs=[
            pl.BlockSpec((1, Np, Kp2), lambda b, d: (b, 0, 0)),   # patchified act
            cst((Kp2, D)), cst((1, D)), cst((Np, D)),             # conv2_w, conv2_b, pos
            per_layer((1, D)), per_layer((1, D)),                 # ln1 g, b
            per_layer((D, 3 * inner)), per_layer((inner, D)), per_layer((1, D)),
            per_layer((1, D)), per_layer((1, D)),                 # ln2 g, b
            per_layer((D, mlp)), per_layer((1, mlp)),
            per_layer((mlp, D)), per_layer((1, D)),
            cst((1, D)), cst((1, D)), cst((D, L)), cst((1, L)),   # final norm + latent
        ],
        out_specs=pl.BlockSpec((1, Np, L), lambda b, d: (b, 0, 0)),
        scratch_shapes=[pltpu.VMEM((Np, D), jnp.float32)],        # tokens stay in VMEM
        compiler_params=pltpu.CompilerParams(
            dimension_semantics=("parallel", "arbitrary")),
    )(
        hp, params["conv2_w"], params["conv2_b"].reshape(1, D), params["pos"],
        sp["ln1g"], sp["ln1b"], sp["wqkv"], sp["wo"], sp["bo"],
        sp["ln2g"], sp["ln2b"], sp["w1"], sp["b1"], sp["w2"], sp["b2"],
        params["norm_g"].reshape(1, D), params["norm_b"].reshape(1, D),
        params["wlat"], params["blat"].reshape(1, L),
    )


# ----------------------------------------------------------------------------
# Glue: sincos positional embedding, parameter init, end-to-end forward
# ----------------------------------------------------------------------------
def _sincos_1d(embed_dim, pos):
    omega = jnp.arange(embed_dim // 2, dtype=jnp.float32) / (embed_dim / 2.0)
    omega = 1.0 / (10000.0 ** omega)
    out = jnp.einsum("m,d->md", pos.reshape(-1), omega)
    return jnp.concatenate([jnp.sin(out), jnp.cos(out)], axis=1)


def get_2d_sincos_pos_embed(embed_dim, grid_size):
    gh, gw = grid_size
    grid_h = jnp.arange(gh, dtype=jnp.float32)
    grid_w = jnp.arange(gw, dtype=jnp.float32)
    gw_m, gh_m = jnp.meshgrid(grid_w, grid_h)        # each (gh, gw)
    emb_h = _sincos_1d(embed_dim // 2, gw_m)
    emb_w = _sincos_1d(embed_dim // 2, gh_m)
    return jnp.concatenate([emb_h, emb_w], axis=1)   # (gh*gw, embed_dim)


def init_params(key, *, channels, dim, patch, depth, heads, dim_head, mlp_dim,
                latent_dim, grid_size):
    inner = heads * dim_head
    keys = iter(jax.random.split(key, 8 + 8 * depth))
    nrm = lambda shape: 0.02 * jax.random.normal(next(keys), shape, jnp.float32)
    params = {
        "conv1_w": nrm((3 * 3 * channels, dim)),
        "conv1_b": jnp.zeros((dim,), jnp.float32),
        "conv2_w": nrm((patch * patch * dim, dim)),
        "conv2_b": jnp.zeros((dim,), jnp.float32),
        "pos": get_2d_sincos_pos_embed(dim, grid_size).astype(jnp.float32),
        "layers": [],
        "norm_g": jnp.ones((dim,), jnp.float32),
        "norm_b": jnp.zeros((dim,), jnp.float32),
        "wlat": nrm((dim, latent_dim)),
        "blat": jnp.zeros((latent_dim,), jnp.float32),
    }
    for _ in range(depth):
        params["layers"].append({
            "ln1_g": jnp.ones((dim,), jnp.float32),
            "ln1_b": jnp.zeros((dim,), jnp.float32),
            "wqkv": nrm((dim, 3 * inner)),
            "wo": nrm((inner, dim)),
            "bo": jnp.zeros((dim,), jnp.float32),
            "ln2_g": jnp.ones((dim,), jnp.float32),
            "ln2_b": jnp.zeros((dim,), jnp.float32),
            "w1": nrm((dim, mlp_dim)),
            "b1": jnp.zeros((mlp_dim,), jnp.float32),
            "w2": nrm((mlp_dim, dim)),
            "b2": jnp.zeros((dim,), jnp.float32),
        })
    return params


def vit_encoder_forward(x_nchw, params, *, patch, heads, dim_head):
    B, C, H, W = x_nchw.shape
    dim = params["conv1_w"].shape[1]
    x = jnp.transpose(x_nchw, (0, 2, 3, 1))                 # NCHW -> NHWC (glue)

    # conv1: 3x3, padding=1 -> im2col (glue) + Pallas tiled matmul+bias+ReLU
    xp = jnp.pad(x, ((0, 0), (1, 1), (1, 1), (0, 0)))
    cols = jnp.concatenate(
        [xp[:, i:i + H, j:j + W, :] for i in range(3) for j in range(3)], axis=-1
    ).reshape(B * H * W, 9 * C)
    K = 9 * C
    Kp = ((K + 7) // 8) * 8                                  # pad contraction dim
    cols = jnp.pad(cols, ((0, 0), (0, Kp - K)))
    w1 = jnp.pad(params["conv1_w"], ((0, Kp - K), (0, 0)))
    h = matmul_bias_act(cols, w1, params["conv1_b"], act="relu")

    # patchify (glue): (B*H*W, dim) -> (B, Np, patch*patch*dim)
    Hp, Wp = H // patch, W // patch
    hp = (h.reshape(B, Hp, patch, Wp, patch, dim)
            .transpose(0, 1, 3, 2, 4, 5)
            .reshape(B, Hp * Wp, patch * patch * dim))

    # fused patch-embed + transformer stack + final LN + to_latent (one kernel)
    return vit_body(hp, params, heads=heads, dim_head=dim_head)


# ----------------------------------------------------------------------------
if __name__ == "__main__":
    B, C, H, W = 2, 3, 16, 16
    patch = 4
    dim, depth, heads, dim_head, mlp_dim, latent_dim = 32, 2, 2, 16, 64, 32

    key = jax.random.PRNGKey(0)
    kx, kp = jax.random.split(key)
    x = jax.random.normal(kx, (B, C, H, W), jnp.float32)     # NCHW like PyTorch

    params = init_params(
        kp, channels=C, dim=dim, patch=patch, depth=depth, heads=heads,
        dim_head=dim_head, mlp_dim=mlp_dim, latent_dim=latent_dim,
        grid_size=(H // patch, W // patch),
    )

    fwd = jax.jit(functools.partial(vit_encoder_forward, patch=patch,
                                    heads=heads, dim_head=dim_head))
    y = fwd(x, params)
    jax.block_until_ready(y)
    assert y.shape == (B, (H // patch) * (W // patch), latent_dim)
    print("KERNEL_OK")
</pallas_src>

<mosaic_0001>
module attributes {stable_mosaic.version = 11 : i64} {
  func.func @_matmul_bias_act_kernel(%arg0: i32, %arg1: memref<256x32xf32, #tpu.memory_space<vmem>>, %arg2: memref<32x32xf32, #tpu.memory_space<vmem>>, %arg3: memref<1x32xf32, #tpu.memory_space<vmem>>, %arg4: memref<256x32xf32, #tpu.memory_space<vmem>>) attributes {dimension_semantics = [#tpu.dimension_semantics<parallel>], iteration_bounds = array<i64: 2>, scalar_prefetch = 0 : i64, scratch_operands = 0 : i64, tpu.core_type = #tpu.core_type<tc>, window_params = [{transform_indices = @transform_0, window_bounds = array<i64: 256, 32>}, {pipeline_mode = #tpu.pipeline_mode<synchronous>, transform_indices = @transform_1, window_bounds = array<i64: 32, 32>}, {pipeline_mode = #tpu.pipeline_mode<synchronous>, transform_indices = @transform_2, window_bounds = array<i64: 1, 32>}, {transform_indices = @transform_3, window_bounds = array<i64: 256, 32>}]} {
    %c0 = arith.constant 0 : index
    %c0_0 = arith.constant 0 : index
    %0 = vector.load %arg1[%c0, %c0_0] : memref<256x32xf32, #tpu.memory_space<vmem>>, vector<256x32xf32>
    %1 = arith.truncf %0 : vector<256x32xf32> to vector<256x32xbf16>
    %c0_1 = arith.constant 0 : index
    %c0_2 = arith.constant 0 : index
    %2 = vector.load %arg2[%c0_1, %c0_2] : memref<32x32xf32, #tpu.memory_space<vmem>>, vector<32x32xf32>
    %3 = arith.truncf %2 : vector<32x32xf32> to vector<32x32xbf16>
    %cst = arith.constant dense<0.000000e+00> : vector<256x32xf32>
    %4 = tpu.matmul %1, %3, %cst {dimension_numbers = #tpu.dot_dimension_numbers<[1], [0], [0], [1], [0, 0, 1, 1], [], []>} : vector<256x32xbf16>, vector<32x32xbf16>, vector<256x32xf32> -> vector<256x32xf32>
    %c0_3 = arith.constant 0 : index
    %c0_4 = arith.constant 0 : index
    %5 = vector.load %arg3[%c0_3, %c0_4] : memref<1x32xf32, #tpu.memory_space<vmem>>, vector<1x32xf32>
    %6 = vector.broadcast %5 : vector<1x32xf32> to vector<256x32xf32>
    %7 = arith.addf %4, %6 : vector<256x32xf32>
    %cst_5 = arith.constant 0.000000e+00 : f32
    %8 = vector.broadcast %cst_5 : f32 to vector<256x32xf32>
    %9 = arith.maximumf %7, %8 : vector<256x32xf32>
    %c0_6 = arith.constant 0 : index
    %c0_7 = arith.constant 0 : index
    %10 = vector.load %arg4[%c0_6, %c0_7] : memref<256x32xf32, #tpu.memory_space<vmem>>, vector<256x32xf32>
    tpu.vector_store %arg4[%c0_6, %c0_7], %9 {strides = array<i32>} : memref<256x32xf32, #tpu.memory_space<vmem>>, vector<256x32xf32>,
    return
  }
  func.func @transform_0(%arg0: i32) -> (i32, i32) {
    %c0_i32 = arith.constant 0 : i32
    %c0_i32_0 = arith.constant 0 : i32
    return %arg0, %c0_i32 : i32, i32
  }
  func.func @transform_1(%arg0: i32) -> (i32, i32) {
    %c0_i32 = arith.constant 0 : i32
    %c0_i32_0 = arith.constant 0 : i32
    %c0_i32_1 = arith.constant 0 : i32
    return %c0_i32, %c0_i32_0 : i32, i32
  }
  func.func @transform_2(%arg0: i32) -> (i32, i32) {
    %c0_i32 = arith.constant 0 : i32
    %c0_i32_0 = arith.constant 0 : i32
    %c0_i32_1 = arith.constant 0 : i32
    return %c0_i32, %c0_i32_0 : i32, i32
  }
  func.func @transform_3(%arg0: i32) -> (i32, i32) {
    %c0_i32 = arith.constant 0 : i32
    %c0_i32_0 = arith.constant 0 : i32
    return %arg0, %c0_i32 : i32, i32
  }
}

module attributes {stable_mosaic.version = 11 : i64} {
  func.func @_vit_body_kernel(%arg0: i32, %arg1: i32, %arg2: memref<1x16x512xf32, #tpu.memory_space<vmem>>, %arg3: memref<512x32xf32, #tpu.memory_space<vmem>>, %arg4: memref<1x32xf32, #tpu.memory_space<vmem>>, %arg5: memref<16x32xf32, #tpu.memory_space<vmem>>, %arg6: memref<1x1x32xf32, #tpu.memory_space<vmem>>, %arg7: memref<1x1x32xf32, #tpu.memory_space<vmem>>, %arg8: memref<1x32x96xf32, #tpu.memory_space<vmem>>, %arg9: memref<1x32x32xf32, #tpu.memory_space<vmem>>, %arg10: memref<1x1x32xf32, #tpu.memory_space<vmem>>, %arg11: memref<1x1x32xf32, #tpu.memory_space<vmem>>, %arg12: memref<1x1x32xf32, #tpu.memory_space<vmem>>, %arg13: memref<1x32x64xf32, #tpu.memory_space<vmem>>, %arg14: memref<1x1x64xf32, #tpu.memory_space<vmem>>, %arg15: memref<1x64x32xf32, #tpu.memory_space<vmem>>, %arg16: memref<1x1x32xf32, #tpu.memory_space<vmem>>, %arg17: memref<1x32xf32, #tpu.memory_space<vmem>>, %arg18: memref<1x32xf32, #tpu.memory_space<vmem>>, %arg19: memref<32x32xf32, #tpu.memory_space<vmem>>, %arg20: memref<1x32xf32, #tpu.memory_space<vmem>>, %arg21: memref<1x16x32xf32, #tpu.memory_space<vmem>>, %arg22: memref<16x32xf32, #tpu.memory_space<vmem>>) attributes {dimension_semantics = [#tpu.dimension_semantics<parallel>, #tpu.dimension_semantics<arbitrary>], iteration_bounds = array<i64: 2, 2>, scalar_prefetch = 0 : i64, scratch_operands = 1 : i64, tpu.core_type = #tpu.core_type<tc>, window_params = [{transform_indices = @transform_0, window_bounds = array<i64: 1, 16, 512>}, {pipeline_mode = #tpu.pipeline_mode<synchronous>, transform_indices = @transform_1, window_bounds = array<i64: 512, 32>}, {pipeline_mode = #tpu.pipeline_mode<synchronous>, transform_indices = @transform_2, window_bounds = array<i64: 1, 32>}, {pipeline_mode = #tpu.pipeline_mode<synchronous>, transform_indices = @transform_3, window_bounds = array<i64: 16, 32>}, {transform_indices = @transform_4, window_bounds = array<i64: 1, 1, 32>}, {transform_indices = @transform_5, window_bounds = array<i64: 1, 1, 32>}, {transform_indices = @transform_6, window_bounds = array<i64: 1, 32, 96>}, {transform_indices = @transform_7, window_bounds = array<i64: 1, 32, 32>}, {transform_indices = @transform_8, window_bounds = array<i64: 1, 1, 32>}, {transform_indices = @transform_9, window_bounds = array<i64: 1, 1, 32>}, {transform_indices = @transform_10, window_bounds = array<i64: 1, 1, 32>}, {transform_indices = @transform_11, window_bounds = array<i64: 1, 32, 64>}, {transform_indices = @transform_12, window_bounds = array<i64: 1, 1, 64>}, {transform_indices = @transform_13, window_bounds = array<i64: 1, 64, 32>}, {transform_indices = @transform_14, window_bounds = array<i64: 1, 1, 32>}, {pipeline_mode = #tpu.pipeline_mode<synchronous>, transform_indices = @transform_15, window_bounds = array<i64: 1, 32>}, {pipeline_mode = #tpu.pipeline_mode<synchronous>, transform_indices = @transform_16, window_bounds = array<i64: 1, 32>}, {pipeline_mode = #tpu.pipeline_mode<synchronous>, transform_indices = @transform_17, window_bounds = array<i64: 32, 32>}, {pipeline_mode = #tpu.pipeline_mode<synchronous>, transform_indices = @transform_18, window_bounds = array<i64: 1, 32>}, {transform_indices = @transform_19, window_bounds = array<i64: 1, 16, 32>}]} {
    %c0_i32 = arith.constant 0 : i32
    %0 = arith.cmpi eq, %arg1, %c0_i32 : i32
    %1 = arith.extui %0 : i1 to i32
    %c0_i32_0 = arith.constant 0 : i32
    %2 = arith.cmpi ne, %1, %c0_i32_0 : i32
    scf.if %2 {
      %c0_59 = arith.constant 0 : index
      %c0_60 = arith.constant 0 : index
      %c0_61 = arith.constant 0 : index
      %134 = vector.load %arg2[%c0_59, %c0_60, %c0_61] : memref<1x16x512xf32, #tpu.memory_space<vmem>>, vector<1x16x512xf32>
      %135 = vector.shape_cast %134 : vector<1x16x512xf32> to vector<16x512xf32>
      %136 = arith.truncf %135 : vector<16x512xf32> to vector<16x512xbf16>
      %c0_62 = arith.constant 0 : index
      %c0_63 = arith.constant 0 : index
      %137 = vector.load %arg3[%c0_62, %c0_63] : memref<512x32xf32, #tpu.memory_space<vmem>>, vector<512x32xf32>
      %138 = arith.truncf %137 : vector<512x32xf32> to vector<512x32xbf16>
      %cst_64 = arith.constant dense<0.000000e+00> : vector<16x32xf32>
      %139 = tpu.matmul %136, %138, %cst_64 {dimension_numbers = #tpu.dot_dimension_numbers<[1], [0], [0], [1], [0, 0, 1, 1], [], []>} : vector<16x512xbf16>, vector<512x32xbf16>, vector<16x32xf32> -> vector<16x32xf32>
      %c0_65 = arith.constant 0 : index
      %c0_66 = arith.constant 0 : index
      %140 = vector.load %arg4[%c0_65, %c0_66] : memref<1x32xf32, #tpu.memory_space<vmem>>, vector<1x32xf32>
      %141 = vector.broadcast %140 : vector<1x32xf32> to vector<16x32xf32>
      %142 = arith.addf %139, %141 : vector<16x32xf32>
      %c0_67 = arith.constant 0 : index
      %c0_68 = arith.constant 0 : index
      %143 = vector.load %arg5[%c0_67, %c0_68] : memref<16x32xf32, #tpu.memory_space<vmem>>, vector<16x32xf32>
      %144 = arith.addf %142, %143 : vector<16x32xf32>
      %c0_69 = arith.constant 0 : index
      %c0_70 = arith.constant 0 : index
      %145 = vector.load %arg22[%c0_69, %c0_70] : memref<16x32xf32, #tpu.memory_space<vmem>>, vector<16x32xf32>
      tpu.vector_store %arg22[%c0_69, %c0_70], %144 {strides = array<i32>} : memref<16x32xf32, #tpu.memory_space<vmem>>, vector<16x32xf32>,
    } else {
    }
    %c0 = arith.constant 0 : index
    %c0_1 = arith.constant 0 : index
    %3 = vector.load %arg22[%c0, %c0_1] : memref<16x32xf32, #tpu.memory_space<vmem>>, vector<16x32xf32>
    %c0_2 = arith.constant 0 : index
    %c0_3 = arith.constant 0 : index
    %c0_4 = arith.constant 0 : index
    %4 = vector.load %arg6[%c0_2, %c0_3, %c0_4] : memref<1x1x32xf32, #tpu.memory_space<vmem>>, vector<1x1x32xf32>
    %5 = vector.shape_cast %4 : vector<1x1x32xf32> to vector<1x32xf32>
    %c0_5 = arith.constant 0 : index
    %c0_6 = arith.constant 0 : index
    %c0_7 = arith.constant 0 : index
    %6 = vector.load %arg7[%c0_5, %c0_6, %c0_7] : memref<1x1x32xf32, #tpu.memory_space<vmem>>, vector<1x1x32xf32>
    %7 = vector.shape_cast %6 : vector<1x1x32xf32> to vector<1x32xf32>
    %cst = arith.constant dense<0.000000e+00> : vector<16xf32>
    %8 = vector.multi_reduction <add>, %3, %cst [1] : vector<16x32xf32> to vector<16xf32>
    %9 = vector.shape_cast %8 : vector<16xf32> to vector<16x1xf32>
    %cst_8 = arith.constant 3.200000e+01 : f32
    %10 = vector.broadcast %cst_8 : f32 to vector<16x1xf32>
    %11 = arith.divf %9, %10 : vector<16x1xf32>
    %12 = vector.broadcast %11 : vector<16x1xf32> to vector<16x32xf32>
    %13 = arith.subf %3, %12 : vector<16x32xf32>
    %14 = arith.mulf %13, %13 : vector<16x32xf32>
    %cst_9 = arith.constant dense<0.000000e+00> : vector<16xf32>
    %15 = vector.multi_reduction <add>, %14, %cst_9 [1] : vector<16x32xf32> to vector<16xf32>
    %16 = vector.shape_cast %15 : vector<16xf32> to vector<16x1xf32>
    %cst_10 = arith.constant 3.200000e+01 : f32
    %17 = vector.broadcast %cst_10 : f32 to vector<16x1xf32>
    %18 = arith.divf %16, %17 : vector<16x1xf32>
    %19 = vector.broadcast %11 : vector<16x1xf32> to vector<16x32xf32>
    %20 = arith.subf %3, %19 : vector<16x32xf32>
    %cst_11 = arith.constant 9.99999974E-6 : f32
    %21 = vector.broadcast %cst_11 : f32 to vector<16x1xf32>
    %22 = arith.addf %18, %21 : vector<16x1xf32>
    %23 = math.rsqrt %22 : vector<16x1xf32>
    %24 = vector.broadcast %23 : vector<16x1xf32> to vector<16x32xf32>
    %25 = arith.mulf %20, %24 : vector<16x32xf32>
    %26 = vector.broadcast %5 : vector<1x32xf32> to vector<16x32xf32>
    %27 = arith.mulf %25, %26 : vector<16x32xf32>
    %28 = vector.broadcast %7 : vector<1x32xf32> to vector<16x32xf32>
    %29 = arith.addf %27, %28 : vector<16x32xf32>
    %30 = arith.truncf %29 : vector<16x32xf32> to vector<16x32xbf16>
    %c0_12 = arith.constant 0 : index
    %c0_13 = arith.constant 0 : index
    %c0_14 = arith.constant 0 : index
    %31 = vector.load %arg8[%c0_12, %c0_13, %c0_14] : memref<1x32x96xf32, #tpu.memory_space<vmem>>, vector<1x32x96xf32>
    %32 = vector.shape_cast %31 : vector<1x32x96xf32> to vector<32x96xf32>
    %33 = arith.truncf %32 : vector<32x96xf32> to vector<32x96xbf16>
    %cst_15 = arith.constant dense<0.000000e+00> : vector<16x96xf32>
    %34 = tpu.matmul %30, %33, %cst_15 {dimension_numbers = #tpu.dot_dimension_numbers<[1], [0], [0], [1], [0, 0, 1, 1], [], []>} : vector<16x32xbf16>, vector<32x96xbf16>, vector<16x96xf32> -> vector<16x96xf32>
    %35 = vector.extract_strided_slice %34 {offsets = [0, 0], sizes = [16, 16], strides = [1, 1]} : vector<16x96xf32> to vector<16x16xf32>
    %36 = arith.truncf %35 : vector<16x16xf32> to vector<16x16xbf16>
    %37 = vector.extract_strided_slice %34 {offsets = [0, 32], sizes = [16, 16], strides = [1, 1]} : vector<16x96xf32> to vector<16x16xf32>
    %38 = arith.truncf %37 : vector<16x16xf32> to vector<16x16xbf16>
    %39 = vector.extract_strided_slice %34 {offsets = [0, 64], sizes = [16, 16], strides = [1, 1]} : vector<16x96xf32> to vector<16x16xf32>
    %40 = arith.truncf %39 : vector<16x16xf32> to vector<16x16xbf16>
    %cst_16 = arith.constant dense<0.000000e+00> : vector<16x16xf32>
    %41 = tpu.matmul %36, %38, %cst_16 {dimension_numbers = #tpu.dot_dimension_numbers<[1], [1], [0], [0], [0, 0, 1, 0], [], []>} : vector<16x16xbf16>, vector<16x16xbf16>, vector<16x16xf32> -> vector<16x16xf32>
    %cst_17 = arith.constant dense<0xFF800000> : vector<16xf32>
    %42 = vector.multi_reduction <maximumf>, %41, %cst_17 [1] : vector<16x16xf32> to vector<16xf32>
    %43 = vector.shape_cast %42 : vector<16xf32> to vector<16x1xf32>
    %44 = vector.broadcast %43 : vector<16x1xf32> to vector<16x16xf32>
    %45 = arith.subf %41, %44 : vector<16x16xf32>
    %46 = math.exp %45 : vector<16x16xf32>
    %cst_18 = arith.constant dense<0.000000e+00> : vector<16xf32>
    %47 = vector.multi_reduction <add>, %46, %cst_18 [1] : vector<16x16xf32> to vector<16xf32>
    %48 = vector.shape_cast %47 : vector<16xf32> to vector<16x1xf32>
    %49 = tpu.reciprocal %48 {approx = true} : vector<16x1xf32> -> vector<16x1xf32>
    %50 = vector.broadcast %49 : vector<16x1xf32> to vector<16x16xf32>
    %51 = arith.mulf %46, %50 : vector<16x16xf32>
    %52 = arith.truncf %51 : vector<16x16xf32> to vector<16x16xbf16>
    %cst_19 = arith.constant dense<0.000000e+00> : vector<16x16xf32>
    %53 = tpu.matmul %52, %40, %cst_19 {dimension_numbers = #tpu.dot_dimension_numbers<[1], [0], [0], [1], [0, 0, 1, 1], [], []>} : vector<16x16xbf16>, vector<16x16xbf16>, vector<16x16xf32> -> vector<16x16xf32>
    %54 = vector.extract_strided_slice %34 {offsets = [0, 16], sizes = [16, 16], strides = [1, 1]} : vector<16x96xf32> to vector<16x16xf32>
    %55 = arith.truncf %54 : vector<16x16xf32> to vector<16x16xbf16>
    %56 = vector.extract_strided_slice %34 {offsets = [0, 48], sizes = [16, 16], strides = [1, 1]} : vector<16x96xf32> to vector<16x16xf32>
    %57 = arith.truncf %56 : vector<16x16xf32> to vector<16x16xbf16>
    %58 = vector.extract_strided_slice %34 {offsets = [0, 80], sizes = [16, 16], strides = [1, 1]} : vector<16x96xf32> to vector<16x16xf32>
    %59 = arith.truncf %58 : vector<16x16xf32> to vector<16x16xbf16>
    %cst_20 = arith.constant dense<0.000000e+00> : vector<16x16xf32>
    %60 = tpu.matmul %55, %57, %cst_20 {dimension_numbers = #tpu.dot_dimension_numbers<[1], [1], [0], [0], [0, 0, 1, 0], [], []>} : vector<16x16xbf16>, vector<16x16xbf16>, vector<16x16xf32> -> vector<16x16xf32>
    %cst_21 = arith.constant dense<0xFF800000> : vector<16xf32>
    %61 = vector.multi_reduction <maximumf>, %60, %cst_21 [1] : vector<16x16xf32> to vector<16xf32>
    %62 = vector.shape_cast %61 : vector<16xf32> to vector<16x1xf32>
    %63 = vector.broadcast %62 : vector<16x1xf32> to vector<16x16xf32>
    %64 = arith.subf %60, %63 : vector<16x16xf32>
    %65 = math.exp %64 : vector<16x16xf32>
    %cst_22 = arith.constant dense<0.000000e+00> : vector<16xf32>
    %66 = vector.multi_reduction <add>, %65, %cst_22 [1] : vector<16x16xf32> to vector<16xf32>
    %67 = vector.shape_cast %66 : vector<16xf32> to vector<16x1xf32>
    %68 = tpu.reciprocal %67 {approx = true} : vector<16x1xf32> -> vector<16x1xf32>
    %69 = vector.broadcast %68 : vector<16x1xf32> to vector<16x16xf32>
    %70 = arith.mulf %65, %69 : vector<16x16xf32>
    %71 = arith.truncf %70 : vector<16x16xf32> to vector<16x16xbf16>
    %cst_23 = arith.constant dense<0.000000e+00> : vector<16x16xf32>
    %72 = tpu.matmul %71, %59, %cst_23 {dimension_numbers = #tpu.dot_dimension_numbers<[1], [0], [0], [1], [0, 0, 1, 1], [], []>} : vector<16x16xbf16>, vector<16x16xbf16>, vector<16x16xf32> -> vector<16x16xf32>
    %73 = tpu.concatenate %53, %72 in 1 : vector<16x16xf32>, vector<16x16xf32> -> vector<16x32xf32>
    %74 = arith.truncf %73 : vector<16x32xf32> to vector<16x32xbf16>
    %c0_24 = arith.constant 0 : index
    %c0_25 = arith.constant 0 : index
    %c0_26 = arith.constant 0 : index
    %75 = vector.load %arg9[%c0_24, %c0_25, %c0_26] : memref<1x32x32xf32, #tpu.memory_space<vmem>>, vector<1x32x32xf32>
    %76 = vector.shape_cast %75 : vector<1x32x32xf32> to vector<32x32xf32>
    %77 = arith.truncf %76 : vector<32x32xf32> to vector<32x32xbf16>
    %cst_27 = arith.constant dense<0.000000e+00> : vector<16x32xf32>
    %78 = tpu.matmul %74, %77, %cst_27 {dimension_numbers = #tpu.dot_dimension_numbers<[1], [0], [0], [1], [0, 0, 1, 1], [], []>} : vector<16x32xbf16>, vector<32x32xbf16>, vector<16x32xf32> -> vector<16x32xf32>
    %c0_28 = arith.constant 0 : index
    %c0_29 = arith.constant 0 : index
    %c0_30 = arith.constant 0 : index
    %79 = vector.load %arg10[%c0_28, %c0_29, %c0_30] : memref<1x1x32xf32, #tpu.memory_space<vmem>>, vector<1x1x32xf32>
    %80 = vector.shape_cast %79 : vector<1x1x32xf32> to vector<1x32xf32>
    %81 = vector.broadcast %80 : vector<1x32xf32> to vector<16x32xf32>
    %82 = arith.addf %78, %81 : vector<16x32xf32>
    %83 = arith.addf %3, %82 : vector<16x32xf32>
    %c0_31 = arith.constant 0 : index
    %c0_32 = arith.constant 0 : index
    %c0_33 = arith.constant 0 : index
    %84 = vector.load %arg11[%c0_31, %c0_32, %c0_33] : memref<1x1x32xf32, #tpu.memory_space<vmem>>, vector<1x1x32xf32>
    %85 = vector.shape_cast %84 : vector<1x1x32xf32> to vector<1x32xf32>
    %c0_34 = arith.constant 0 : index
    %c0_35 = arith.constant 0 : index
    %c0_36 = arith.constant 0 : index
    %86 = vector.load %arg12[%c0_34, %c0_35, %c0_36] : memref<1x1x32xf32, #tpu.memory_space<vmem>>, vector<1x1x32xf32>
    %87 = vector.shape_cast %86 : vector<1x1x32xf32> to vector<1x32xf32>
    %cst_37 = arith.constant dense<0.000000e+00> : vector<16xf32>
    %88 = vector.multi_reduction <add>, %83, %cst_37 [1] : vector<16x32xf32> to vector<16xf32>
    %89 = vector.shape_cast %88 : vector<16xf32> to vector<16x1xf32>
    %cst_38 = arith.constant 3.200000e+01 : f32
    %90 = vector.broadcast %cst_38 : f32 to vector<16x1xf32>
    %91 = arith.divf %89, %90 : vector<16x1xf32>
    %92 = vector.broadcast %91 : vector<16x1xf32> to vector<16x32xf32>
    %93 = arith.subf %83, %92 : vector<16x32xf32>
    %94 = arith.mulf %93, %93 : vector<16x32xf32>
    %cst_39 = arith.constant dense<0.000000e+00> : vector<16xf32>
    %95 = vector.multi_reduction <add>, %94, %cst_39 [1] : vector<16x32xf32> to vector<16xf32>
    %96 = vector.shape_cast %95 : vector<16xf32> to vector<16x1xf32>
    %cst_40 = arith.constant 3.200000e+01 : f32
    %97 = vector.broadcast %cst_40 : f32 to vector<16x1xf32>
    %98 = arith.divf %96, %97 : vector<16x1xf32>
    %99 = vector.broadcast %91 : vector<16x1xf32> to vector<16x32xf32>
    %100 = arith.subf %83, %99 : vector<16x32xf32>
    %cst_41 = arith.constant 9.99999974E-6 : f32
    %101 = vector.broadcast %cst_41 : f32 to vector<16x1xf32>
    %102 = arith.addf %98, %101 : vector<16x1xf32>
    %103 = math.rsqrt %102 : vector<16x1xf32>
    %104 = vector.broadcast %103 : vector<16x1xf32> to vector<16x32xf32>
    %105 = arith.mulf %100, %104 : vector<16x32xf32>
    %106 = vector.broadcast %85 : vector<1x32xf32> to vector<16x32xf32>
    %107 = arith.mulf %105, %106 : vector<16x32xf32>
    %108 = vector.broadcast %87 : vector<1x32xf32> to vector<16x32xf32>
    %109 = arith.addf %107, %108 : vector<16x32xf32>
    %110 = arith.truncf %109 : vector<16x32xf32> to vector<16x32xbf16>
    %c0_42 = arith.constant 0 : index
    %c0_43 = arith.constant 0 : index
    %c0_44 = arith.constant 0 : index
    %111 = vector.load %arg13[%c0_42, %c0_43, %c0_44] : memref<1x32x64xf32, #tpu.memory_space<vmem>>, vector<1x32x64xf32>
    %112 = vector.shape_cast %111 : vector<1x32x64xf32> to vector<32x64xf32>
    %113 = arith.truncf %112 : vector<32x64xf32> to vector<32x64xbf16>
    %cst_45 = arith.constant dense<0.000000e+00> : vector<16x64xf32>
    %114 = tpu.matmul %110, %113, %cst_45 {dimension_numbers = #tpu.dot_dimension_numbers<[1], [0], [0], [1], [0, 0, 1, 1], [], []>} : vector<16x32xbf16>, vector<32x64xbf16>, vector<16x64xf32> -> vector<16x64xf32>
    %c0_46 = arith.constant 0 : index
    %c0_47 = arith.constant 0 : index
    %c0_48 = arith.constant 0 : index
    %115 = vector.load %arg14[%c0_46, %c0_47, %c0_48] : memref<1x1x64xf32, #tpu.memory_space<vmem>>, vector<1x1x64xf32>
    %116 = vector.shape_cast %115 : vector<1x1x64xf32> to vector<1x64xf32>
    %117 = vector.broadcast %116 : vector<1x64xf32> to vector<16x64xf32>
    %118 = arith.addf %114, %117 : vector<16x64xf32>
    %119 = math.tanh %118 : vector<16x64xf32>
    %120 = arith.truncf %119 : vector<16x64xf32> to vector<16x64xbf16>
    %c0_49 = arith.constant 0 : index
    %c0_50 = arith.constant 0 : index
    %c0_51 = arith.constant 0 : index
    %121 = vector.load %arg15[%c0_49, %c0_50, %c0_51] : memref<1x64x32xf32, #tpu.memory_space<vmem>>, vector<1x64x32xf32>
    %122 = vector.shape_cast %121 : vector<1x64x32xf32> to vector<64x32xf32>
    %123 = arith.truncf %122 : vector<64x32xf32> to vector<64x32xbf16>
    %cst_52 = arith.constant dense<0.000000e+00> : vector<16x32xf32>
    %124 = tpu.matmul %120, %123, %cst_52 {dimension_numbers = #tpu.dot_dimension_numbers<[1], [0], [0], [1], [0, 0, 1, 1], [], []>} : vector<16x64xbf16>, vector<64x32xbf16>, vector<16x32xf32> -> vector<16x32xf32>
    %c0_53 = arith.constant 0 : index
    %c0_54 = arith.constant 0 : index
    %c0_55 = arith.constant 0 : index
    %125 = vector.load %arg16[%c0_53, %c0_54, %c0_55] : memref<1x1x32xf32, #tpu.memory_space<vmem>>, vector<1x1x32xf32>
    %126 = vector.shape_cast %125 : vector<1x1x32xf32> to vector<1x32xf32>
    %127 = vector.broadcast %126 : vector<1x32xf32> to vector<16x32xf32>
    %128 = arith.addf %124, %127 : vector<16x32xf32>
    %129 = arith.addf %83, %128 : vector<16x32xf32>
    %c0_56 = arith.constant 0 : index
    %c0_57 = arith.constant 0 : index
    %130 = vector.load %arg22[%c0_56, %c0_57] : memref<16x32xf32, #tpu.memory_space<vmem>>, vector<16x32xf32>
    tpu.vector_store %arg22[%c0_56, %c0_57], %129 {strides = array<i32>} : memref<16x32xf32, #tpu.memory_space<vmem>>, vector<16x32xf32>,
    %c1_i32 = arith.constant 1 : i32
    %131 = arith.cmpi eq, %arg1, %c1_i32 : i32
    %132 = arith.extui %131 : i1 to i32
    %c0_i32_58 = arith.constant 0 : i32
    %133 = arith.cmpi ne, %132, %c0_i32_58 : i32
    scf.if %133 {
      %c0_59 = arith.constant 0 : index
      %c0_60 = arith.constant 0 : index
      %134 = vector.load %arg17[%c0_59, %c0_60] : memref<1x32xf32, #tpu.memory_space<vmem>>, vector<1x32xf32>
      %c0_61 = arith.constant 0 : index
      %c0_62 = arith.constant 0 : index
      %135 = vector.load %arg18[%c0_61, %c0_62] : memref<1x32xf32, #tpu.memory_space<vmem>>, vector<1x32xf32>
      %cst_63 = arith.constant dense<0.000000e+00> : vector<16xf32>
      %136 = vector.multi_reduction <add>, %129, %cst_63 [1] : vector<16x32xf32> to vector<16xf32>
      %137 = vector.shape_cast %136 : vector<16xf32> to vector<16x1xf32>
      %cst_64 = arith.constant 3.200000e+01 : f32
      %138 = vector.broadcast %cst_64 : f32 to vector<16x1xf32>
      %139 = arith.divf %137, %138 : vector<16x1xf32>
      %140 = vector.broadcast %139 : vector<16x1xf32> to vector<16x32xf32>
      %141 = arith.subf %129, %140 : vector<16x32xf32>
      %142 = arith.mulf %141, %141 : vector<16x32xf32>
      %cst_65 = arith.constant dense<0.000000e+00> : vector<16xf32>
      %143 = vector.multi_reduction <add>, %142, %cst_65 [1] : vector<16x32xf32> to vector<16xf32>
      %144 = vector.shape_cast %143 : vector<16xf32> to vector<16x1xf32>
      %cst_66 = arith.constant 3.200000e+01 : f32
      %145 = vector.broadcast %cst_66 : f32 to vector<16x1xf32>
      %146 = arith.divf %144, %145 : vector<16x1xf32>
      %147 = vector.broadcast %139 : vector<16x1xf32> to vector<16x32xf32>
      %148 = arith.subf %129, %147 : vector<16x32xf32>
      %cst_67 = arith.constant 9.99999974E-6 : f32
      %149 = vector.broadcast %cst_67 : f32 to vector<16x1xf32>
      %150 = arith.addf %146, %149 : vector<16x1xf32>
      %151 = math.rsqrt %150 : vector<16x1xf32>
      %152 = vector.broadcast %151 : vector<16x1xf32> to vector<16x32xf32>
      %153 = arith.mulf %148, %152 : vector<16x32xf32>
      %154 = vector.broadcast %134 : vector<1x32xf32> to vector<16x32xf32>
      %155 = arith.mulf %153, %154 : vector<16x32xf32>
      %156 = vector.broadcast %135 : vector<1x32xf32> to vector<16x32xf32>
      %157 = arith.addf %155, %156 : vector<16x32xf32>
      %158 = arith.truncf %157 : vector<16x32xf32> to vector<16x32xbf16>
      %c0_68 = arith.constant 0 : index
      %c0_69 = arith.constant 0 : index
      %159 = vector.load %arg19[%c0_68, %c0_69] : memref<32x32xf32, #tpu.memory_space<vmem>>, vector<32x32xf32>
      %160 = arith.truncf %159 : vector<32x32xf32> to vector<32x32xbf16>
      %cst_70 = arith.constant dense<0.000000e+00> : vector<16x32xf32>
      %161 = tpu.matmul %158, %160, %cst_70 {dimension_numbers = #tpu.dot_dimension_numbers<[1], [0], [0], [1], [0, 0, 1, 1], [], []>} : vector<16x32xbf16>, vector<32x32xbf16>, vector<16x32xf32> -> vector<16x32xf32>
      %c0_71 = arith.constant 0 : index
      %c0_72 = arith.constant 0 : index
      %162 = vector.load %arg20[%c0_71, %c0_72] : memref<1x32xf32, #tpu.memory_space<vmem>>, vector<1x32xf32>
      %163 = vector.broadcast %162 : vector<1x32xf32> to vector<16x32xf32>
      %164 = arith.addf %161, %163 : vector<16x32xf32>
      %c0_73 = arith.constant 0 : index
      %c0_74 = arith.constant 0 : index
      %c0_75 = arith.constant 0 : index
      %165 = vector.load %arg21[%c0_73, %c0_74, %c0_75] : memref<1x16x32xf32, #tpu.memory_space<vmem>>, vector<1x16x32xf32>
      %166 = vector.shape_cast %165 : vector<1x16x32xf32> to vector<16x32xf32>
      %167 = vector.shape_cast %164 : vector<16x32xf32> to vector<1x16x32xf32>
      tpu.vector_store %arg21[%c0_73, %c0_74, %c0_75], %167 {strides = array<i32>} : memref<1x16x32xf32, #tpu.memory_space<vmem>>, vector<1x16x32xf32>,
    } else {
    }
    return
  }
  func.func @transform_0(%arg0: i32, %arg1: i32) -> (i32, i32, i32) {
    %c0_i32 = arith.constant 0 : i32
    %c0_i32_0 = arith.constant 0 : i32
    %c0_i32_1 = arith.constant 0 : i32
    return %arg0, %c0_i32, %c0_i32_0 : i32, i32, i32
  }
  func.func @transform_1(%arg0: i32, %arg1: i32) -> (i32, i32) {
    %c0_i32 = arith.constant 0 : i32
    %c0_i32_0 = arith.constant 0 : i32
    %c0_i32_1 = arith.constant 0 : i32
    return %c0_i32, %c0_i32_0 : i32, i32
  }
  func.func @transform_2(%arg0: i32, %arg1: i32) -> (i32, i32) {
    %c0_i32 = arith.constant 0 : i32
    %c0_i32_0 = arith.constant 0 : i32
    %c0_i32_1 = arith.constant 0 : i32
    return %c0_i32, %c0_i32_0 : i32, i32
  }
  func.func @transform_3(%arg0: i32, %arg1: i32) -> (i32, i32) {
    %c0_i32 = arith.constant 0 : i32
    %c0_i32_0 = arith.constant 0 : i32
    %c0_i32_1 = arith.constant 0 : i32
    return %c0_i32, %c0_i32_0 : i32, i32
  }
  func.func @transform_4(%arg0: i32, %arg1: i32) -> (i32, i32, i32) {
    %c0_i32 = arith.constant 0 : i32
    %c0_i32_0 = arith.constant 0 : i32
    %c0_i32_1 = arith.constant 0 : i32
    return %arg1, %c0_i32, %c0_i32_0 : i32, i32, i32
  }
  func.func @transform_5(%arg0: i32, %arg1: i32) -> (i32, i32, i32) {
    %c0_i32 = arith.constant 0 : i32
    %c0_i32_0 = arith.constant 0 : i32
    %c0_i32_1 = arith.constant 0 : i32
    return %arg1, %c0_i32, %c0_i32_0 : i32, i32, i32
  }
  func.func @transform_6(%arg0: i32, %arg1: i32) -> (i32, i32, i32) {
    %c0_i32 = arith.constant 0 : i32
    %c0_i32_0 = arith.constant 0 : i32
    %c0_i32_1 = arith.constant 0 : i32
    return %arg1, %c0_i32, %c0_i32_0 : i32, i32, i32
  }
  func.func @transform_7(%arg0: i32, %arg1: i32) -> (i32, i32, i32) {
    %c0_i32 = arith.constant 0 : i32
    %c0_i32_0 = arith.constant 0 : i32
    %c0_i32_1 = arith.constant 0 : i32
    return %arg1, %c0_i32, %c0_i32_0 : i32, i32, i32
  }
  func.func @transform_8(%arg0: i32, %arg1: i32) -> (i32, i32, i32) {
    %c0_i32 = arith.constant 0 : i32
    %c0_i32_0 = arith.constant 0 : i32
    %c0_i32_1 = arith.constant 0 : i32
    return %arg1, %c0_i32, %c0_i32_0 : i32, i32, i32
  }
  func.func @transform_9(%arg0: i32, %arg1: i32) -> (i32, i32, i32) {
    %c0_i32 = arith.constant 0 : i32
    %c0_i32_0 = arith.constant 0 : i32
    %c0_i32_1 = arith.constant 0 : i32
    return %arg1, %c0_i32, %c0_i32_0 : i32, i32, i32
  }
  func.func @transform_10(%arg0: i32, %arg1: i32) -> (i32, i32, i32) {
    %c0_i32 = arith.constant 0 : i32
    %c0_i32_0 = arith.constant 0 : i32
    %c0_i32_1 = arith.constant 0 : i32
    return %arg1, %c0_i32, %c0_i32_0 : i32, i32, i32
  }
  func.func @transform_11(%arg0: i32, %arg1: i32) -> (i32, i32, i32) {
    %c0_i32 = arith.constant 0 : i32
    %c0_i32_0 = arith.constant 0 : i32
    %c0_i32_1 = arith.constant 0 : i32
    return %arg1, %c0_i32, %c0_i32_0 : i32, i32, i32
  }
  func.func @transform_12(%arg0: i32, %arg1: i32) -> (i32, i32, i32) {
    %c0_i32 = arith.constant 0 : i32
    %c0_i32_0 = arith.constant 0 : i32
    %c0_i32_1 = arith.constant 0 : i32
    return %arg1, %c0_i32, %c0_i32_0 : i32, i32, i32
  }
  func.func @transform_13(%arg0: i32, %arg1: i32) -> (i32, i32, i32) {
    %c0_i32 = arith.constant 0 : i32
    %c0_i32_0 = arith.constant 0 : i32
    %c0_i32_1 = arith.constant 0 : i32
    return %arg1, %c0_i32, %c0_i32_0 : i32, i32, i32
  }
  func.func @transform_14(%arg0: i32, %arg1: i32) -> (i32, i32, i32) {
    %c0_i32 = arith.constant 0 : i32
    %c0_i32_0 = arith.constant 0 : i32
    %c0_i32_1 = arith.constant 0 : i32
    return %arg1, %c0_i32, %c0_i32_0 : i32, i32, i32
  }
  func.func @transform_15(%arg0: i32, %arg1: i32) -> (i32, i32) {
    %c0_i32 = arith.constant 0 : i32
    %c0_i32_0 = arith.constant 0 : i32
    %c0_i32_1 = arith.constant 0 : i32
    return %c0_i32, %c0_i32_0 : i32, i32
  }
  func.func @transform_16(%arg0: i32, %arg1: i32) -> (i32, i32) {
    %c0_i32 = arith.constant 0 : i32
    %c0_i32_0 = arith.constant 0 : i32
    %c0_i32_1 = arith.constant 0 : i32
    return %c0_i32, %c0_i32_0 : i32, i32
  }
  func.func @transform_17(%arg0: i32, %arg1: i32) -> (i32, i32) {
    %c0_i32 = arith.constant 0 : i32
    %c0_i32_0 = arith.constant 0 : i32
    %c0_i32_1 = arith.constant 0 : i32
    return %c0_i32, %c0_i32_0 : i32, i32
  }
  func.func @transform_18(%arg0: i32, %arg1: i32) -> (i32, i32) {
    %c0_i32 = arith.constant 0 : i32
    %c0_i32_0 = arith.constant 0 : i32
    %c0_i32_1 = arith.constant 0 : i32
    return %c0_i32, %c0_i32_0 : i32, i32
  }
  func.func @transform_19(%arg0: i32, %arg1: i32) -> (i32, i32, i32) {
    %c0_i32 = arith.constant 0 : i32
    %c0_i32_0 = arith.constant 0 : i32
    %c0_i32_1 = arith.constant 0 : i32
    return %arg0, %c0_i32, %c0_i32_0 : i32, i32, i32
  }
}

</mosaic_0001>

<bundles_post_ra>
// kernel: vit_encoder_forward.2
= control target key start
LH: loop header
LB: loop body
LE: loop exit
PB: predicated region body
PF: predicated region fallthrough
CT: control target
= control target key end

     0   :  { %s688_s12 = smov 0   ;;  %s877_s0 = inlined_call_operand.vmem [shape: f32[512,32], index: 0, kind: input, shape index: {}]   ;;  %s878_s1 = inlined_call_operand.vmem [shape: f32[32,32], index: 1, kind: input, shape index: {}]   ;;  %s879_s2 = inlined_call_operand.vmem [shape: f32[1,32], index: 2, kind: input, shape index: {}]   ;;  %s880_s3 = inlined_call_operand.vmem [shape: f32[512,32], index: 3, kind: output, shape index: {}]  }
   0x1 LB: > { %s566_s13 = sadd.s32 4294967295, %s666_s12   ;;  %p570_p0 = scmp.ge.s32.totalorder %s666_s12, 1  ;;  %s666_s12 = sphi %s688_s12, %s13_s12  }
   0x2   : > { %p138_p1 = scmp.lt.s32.totalorder %s666_s12, 3 }
   0x4   : > { %p139_p2 = pnand %p570_p0, %p138_p1 }
   0x5   : > { %s571_s20 = sshll.u32 (!%p139_p2), %s566_s13, 5 }
   0x6   : > { %142 = sbr.rel (%p139_p2) target bundleno = 250 (0xfa), region = 32  ;;  %p163_p3 = scmp.lt.s32.totalorder (!%p139_p2), %s571_s20, 63 }
   0xb   : > { %v225_v0 = vld [vmem:[%s878_s1 + $0x10] sm:$0xff]  ;;  %v226_v1 = vld [vmem:[%s878_s1 + $0x18] sm:$0xff]  ;;  %v223_v2 = vld [vmem:[%s878_s1] sm:$0xff]  ;;  %s882_s20 = smov (!%p163_p3, %s571_s20), 63  ;;  %vm236_vm0 = vcmask 261120  }
   0xc   : > { %v228_v3 = vpack.c.bf16 %v226_v1, %v225_v0  ;;  %v224_v4 = vld [vmem:[%s878_s1 + $0x8] sm:$0xff]  ;;  %s572_s23 = sshll.u32 %s882_s20, 3  ;;  %v769_v54 = vld [vmem:[%s879_s2] ss:$0 sm:$0xff] }
   0xd   : > { %v227_v5 = vpack.c.bf16 %v224_v4, %v223_v2  ;;  %s716_s26 = scalar_lea.vmem %s877_s0, %s572_s23  ;;  %s777_s4 = scalar_lea.vmem %s880_s3, %s572_s23 }
   0xe   : > { %612 = vmatprep.subr.bf16.mxu0 %v228_v3  ;;  %648 = vmatprep.subr.bf16.mxu1 %v228_v3  ;;  %v175_v6 = vld [vmem:[%s716_s26] sm:$0xff]  ;;  %v176_v7 = vld [vmem:[%s716_s26 + $0x8] sm:$0xff]  ;;  %v177_v11 = vld [vmem:[%s716_s26 + $0x10] sm:$0xff] }
   0xf   : > { %613 = vmatpush3.bf16.msra.mxu0 %v228_v3  ;;  %650 = vmatpush3.bf16.msra.mxu1 %v228_v3  ;;  %v191_v8 = vld [vmem:[%s716_s26 + $0x80] sm:$0xff]  ;;  %v207_v9 = vpack.c.bf16 %v176_v7, %v175_v6  ;;  %v192_v10 = vld [vmem:[%s716_s26 + $0x88] sm:$0xff]  ;;  %v178_v12 = vld [vmem:[%s716_s26 + $0x18] sm:$0xff] }
  0x10   : > { %614 = vmatprep.subr.bf16.mxu0 %v227_v5  ;;  %649 = vmatprep.subr.bf16.mxu1 %v227_v5  ;;  %v215_v13 = vpack.c.bf16 %v192_v10, %v191_v8  ;;  %v208_v14 = vpack.c.bf16 %v178_v12, %v177_v11  ;;  %v193_v15 = vld [vmem:[%s716_s26 + $0x90] sm:$0xff]  ;;  %v194_v16 = vld [vmem:[%s716_s26 + $0x98] sm:$0xff]  ;;  %v179_v17 = vld [vmem:[%s716_s26 + $0x20] sm:$0xff] }
  0x11   : > { %616 = vmatprep.mubr.msk.bf16.mxu0 %vm236_vm0, %v207_v9  ;;  %v216_v18 = vpack.c.bf16 %v194_v16, %v193_v15  ;;  %v180_v19 = vld [vmem:[%s716_s26 + $0x28] sm:$0xff]  ;;  %v195_v20 = vld [vmem:[%s716_s26 + $0xa0] sm:$0xff]  ;;  %v181_v24 = vld [vmem:[%s716_s26 + $0x30] sm:$0xff] }
  0x12   : > { %v196_v21 = vld [vmem:[%s716_s26 + $0xa8] sm:$0xff]  ;;  %632 = vmatprep.mubr.msk.bf16.mxu1 %vm236_vm0, %v215_v13  ;;  %v209_v22 = vpack.c.bf16 %v180_v19, %v179_v17  ;;  %v182_v25 = vld [vmem:[%s716_s26 + $0x38] sm:$0xff]  ;;  %v197_v26 = vld [vmem:[%s716_s26 + $0xb0] sm:$0xff] }
  0x13   : > { %615 = vmatpush3.bf16.msra.mxu0 %v227_v5  ;;  %651 = vmatpush3.bf16.msra.mxu1 %v227_v5  ;;  %v217_v23 = vpack.c.bf16 %v196_v21, %v195_v20  ;;  %v198_v27 = vld [vmem:[%s716_s26 + $0xb8] sm:$0xff]  ;;  %v183_v28 = vld [vmem:[%s716_s26 + $0x40] sm:$0xff]  ;;  %v184_v29 = vld [vmem:[%s716_s26 + $0x48] sm:$0xff]  ;;  %v210_v32 = vpack.c.bf16 %v182_v25, %v181_v24 }
  0x14   : > { %v199_v30 = vld [vmem:[%s716_s26 + $0xc0] sm:$0xff]  ;;  %v200_v31 = vld [vmem:[%s716_s26 + $0xc8] sm:$0xff]  ;;  %v218_v33 = vpack.c.bf16 %v198_v27, %v197_v26  ;;  %v211_v34 = vpack.c.bf16 %v184_v29, %v183_v28  ;;  %v185_v36 = vld [vmem:[%s716_s26 + $0x50] sm:$0xff] }
  0x15   : > { %v219_v35 = vpack.c.bf16 %v200_v31, %v199_v30  ;;  %v186_v37 = vld [vmem:[%s716_s26 + $0x58] sm:$0xff]  ;;  %v201_v38 = vld [vmem:[%s716_s26 + $0xd0] sm:$0xff]  ;;  %v187_v40 = vld [vmem:[%s716_s26 + $0x60] sm:$0xff] }
  0x16   : > { %617 = vmatmul.mubr.msk.bf16.vlgmr.msra.gmra.mxu0 %vm236_vm0, %v208_v14  ;;  %633 = vmatmul.mubr.msk.bf16.vlgmr.msra.gmra.mxu1 %vm236_vm0, %v216_v18  ;;  %v202_v39 = vld [vmem:[%s716_s26 + $0xd8] sm:$0xff]  ;;  %v188_v41 = vld [vmem:[%s716_s26 + $0x68] sm:$0xff]  ;;  %v203_v42 = vld [vmem:[%s716_s26 + $0xe0] sm:$0xff]  ;;  %v212_v44 = vpack.c.bf16 %v186_v37, %v185_v36 }
  0x17   : > { %620 = vmatprep.mubr.msk.bf16.mxu0 %vm236_vm0, %v209_v22  ;;  %636 = vmatprep.mubr.msk.bf16.mxu1 %vm236_vm0, %v217_v23  ;;  %v204_v43 = vld [vmem:[%s716_s26 + $0xe8] sm:$0xff]  ;;  %v220_v45 = vpack.c.bf16 %v202_v39, %v201_v38  ;;  %v213_v46 = vpack.c.bf16 %v188_v41, %v187_v40  ;;  %v189_v48 = vld [vmem:[%s716_s26 + $0x70] sm:$0xff]  ;;  %v190_v49 = vld [vmem:[%s716_s26 + $0x78] sm:$0xff] }
  0x18   : > { %v221_v47 = vpack.c.bf16 %v204_v43, %v203_v42  ;;  %v205_v50 = vld [vmem:[%s716_s26 + $0xf0] sm:$0xff]  ;;  %v206_v51 = vld [vmem:[%s716_s26 + $0xf8] sm:$0xff]  ;;  %v214_v52 = vpack.c.bf16 %v190_v49, %v189_v48 }
  0x19   : > { %v222_v53 = vpack.c.bf16 %v206_v51, %v205_v50 }
  0x1e   : > { %621 = vmatmul.mubr.msk.bf16.gmra.mxu0 %vm236_vm0, %v210_v32  ;;  %637 = vmatmul.mubr.msk.bf16.gmra.mxu1 %vm236_vm0, %v218_v33 }
  0x1f   : > { %624 = vmatprep.mubr.msk.bf16.mxu0 %vm236_vm0, %v211_v34  ;;  %640 = vmatprep.mubr.msk.bf16.mxu1 %vm236_vm0, %v219_v35 }
  0x26   : > { %625 = vmatmul.mubr.msk.bf16.gmra.mxu0 %vm236_vm0, %v212_v44  ;;  %641 = vmatmul.mubr.msk.bf16.gmra.mxu1 %vm236_vm0, %v220_v45 }
  0x27   : > { %628 = vmatprep.mubr.msk.bf16.mxu0 %vm236_vm0, %v213_v46  ;;  %644 = vmatprep.mubr.msk.bf16.mxu1 %vm236_vm0, %v221_v47 }
  0x2e   : > { %629 = vmatmul.mubr.msk.bf16.gmra.mxu0 %vm236_vm0, %v214_v52  ;;  %645 = vmatmul.mubr.msk.bf16.gmra.mxu1 %vm236_vm0, %v222_v53 }
  0xd6   : > { %v618_v55 = vpop.f32.mrf.mxu0  ;;  %v634_v57 = vpop.f32.mrf.mxu1 }
  0xd7   : > { %v328_v56 = vadd.f32 %v618_v55, %v769_v54  ;;  %v392_v58 = vadd.f32 %v634_v57, %v769_v54 }
  0xd8   : > { %v319_v59 = vpop.f32.mrf.mxu0  ;;  %v383_v62 = vpop.f32.mrf.mxu1 }
  0xd9   : > { %v448_v60 = vmax.f32 %v328_v56, 0.0  ;;  %v320_v61 = vadd.f32 %v769_v54, %v319_v59  ;;  %v464_v63 = vmax.f32 %v392_v58, 0.0  ;;  %v384_v0 = vadd.f32 %v769_v54, %v383_v62 }
  0xda   : > { %v619_v1 = vpop.f32.mrf.mxu0  ;;  %v635_v4 = vpop.f32.mrf.mxu1 }
  0xdb   : > { %480 = vst.msk [vmem:[%s777_s4 + $0x10] sm:$0xff] %vm236_vm0, %v448_v60  ;;  %v446_v2 = vmax.f32 %v320_v61, 0.0  ;;  %v331_v3 = vadd.f32 %v619_v1, %v769_v54  ;;  %496 = vst.msk [vmem:[%s777_s4 + $0x90] sm:$0xff] %vm236_vm0, %v464_v63  ;;  %v462_v5 = vmax.f32 %v384_v0, 0.0  ;;  %v395_v6 = vadd.f32 %v635_v4, %v769_v54 }
  0xdc   : > { %v322_v7 = vpop.f32.mrf.mxu0  ;;  %v386_v10 = vpop.f32.mrf.mxu1 }
  0xdd   : > { %478 = vst.msk [vmem:[%s777_s4] sm:$0xff] %vm236_vm0, %v446_v2  ;;  %v449_v8 = vmax.f32 %v331_v3, 0.0  ;;  %v323_v9 = vadd.f32 %v769_v54, %v322_v7  ;;  %494 = vst.msk [vmem:[%s777_s4 + $0x80] sm:$0xff] %vm236_vm0, %v462_v5  ;;  %v465_v11 = vmax.f32 %v395_v6, 0.0  ;;  %v387_v12 = vadd.f32 %v769_v54, %v386_v10 }
  0xde   : > { %v622_v13 = vpop.f32.mrf.mxu0  ;;  %v638_v16 = vpop.f32.mrf.mxu1 }
  0xdf   : > { %481 = vst.msk [vmem:[%s777_s4 + $0x18] sm:$0xff] %vm236_vm0, %v449_v8  ;;  %v447_v14 = vmax.f32 %v323_v9, 0.0  ;;  %v344_v15 = vadd.f32 %v622_v13, %v769_v54  ;;  %497 = vst.msk [vmem:[%s777_s4 + $0x98] sm:$0xff] %vm236_vm0, %v465_v11  ;;  %v463_v17 = vmax.f32 %v387_v12, 0.0  ;;  %v408_v18 = vadd.f32 %v638_v16, %v769_v54 }
  0xe0   : > { %v335_v19 = vpop.f32.mrf.mxu0  ;;  %v399_v22 = vpop.f32.mrf.mxu1 }
  0xe1   : > { %479 = vst.msk [vmem:[%s777_s4 + $0x8] sm:$0xff] %vm236_vm0, %v447_v14  ;;  %v452_v20 = vmax.f32 %v344_v15, 0.0  ;;  %v336_v21 = vadd.f32 %v769_v54, %v335_v19  ;;  %495 = vst.msk [vmem:[%s777_s4 + $0x88] sm:$0xff] %vm236_vm0, %v463_v17  ;;  %v468_v23 = vmax.f32 %v408_v18, 0.0  ;;  %v400_v24 = vadd.f32 %v769_v54, %v399_v22 }
  0xe2   : > { %v623_v25 = vpop.f32.mrf.mxu0  ;;  %v639_v28 = vpop.f32.mrf.mxu1 }
  0xe3   : > { %484 = vst.msk [vmem:[%s777_s4 + $0x30] sm:$0xff] %vm236_vm0, %v452_v20  ;;  %v450_v26 = vmax.f32 %v336_v21, 0.0  ;;  %v347_v27 = vadd.f32 %v623_v25, %v769_v54  ;;  %500 = vst.msk [vmem:[%s777_s4 + $0xb0] sm:$0xff] %vm236_vm0, %v468_v23  ;;  %v466_v29 = vmax.f32 %v400_v24, 0.0  ;;  %v411_v30 = vadd.f32 %v639_v28, %v769_v54 }
  0xe4   : > { %v338_v31 = vpop.f32.mrf.mxu0  ;;  %v402_v34 = vpop.f32.mrf.mxu1 }
  0xe5   : > { %482 = vst.msk [vmem:[%s777_s4 + $0x20] sm:$0xff] %vm236_vm0, %v450_v26  ;;  %v453_v32 = vmax.f32 %v347_v27, 0.0  ;;  %v339_v33 = vadd.f32 %v769_v54, %v338_v31  ;;  %498 = vst.msk [vmem:[%s777_s4 + $0xa0] sm:$0xff] %vm236_vm0, %v466_v29  ;;  %v469_v35 = vmax.f32 %v411_v30, 0.0  ;;  %v403_v36 = vadd.f32 %v769_v54, %v402_v34 }
  0xe6   : > { %v626_v37 = vpop.f32.mrf.mxu0  ;;  %v642_v40 = vpop.f32.mrf.mxu1 }
  0xe7   : > { %485 = vst.msk [vmem:[%s777_s4 + $0x38] sm:$0xff] %vm236_vm0, %v453_v32  ;;  %v451_v38 = vmax.f32 %v339_v33, 0.0  ;;  %v360_v39 = vadd.f32 %v626_v37, %v769_v54  ;;  %501 = vst.msk [vmem:[%s777_s4 + $0xb8] sm:$0xff] %vm236_vm0, %v469_v35  ;;  %v467_v41 = vmax.f32 %v403_v36, 0.0  ;;  %v424_v42 = vadd.f32 %v642_v40, %v769_v54 }
  0xe8   : > { %v351_v43 = vpop.f32.mrf.mxu0  ;;  %v415_v46 = vpop.f32.mrf.mxu1 }
  0xe9   : > { %483 = vst.msk [vmem:[%s777_s4 + $0x28] sm:$0xff] %vm236_vm0, %v451_v38  ;;  %v456_v44 = vmax.f32 %v360_v39, 0.0  ;;  %v352_v45 = vadd.f32 %v769_v54, %v351_v43  ;;  %499 = vst.msk [vmem:[%s777_s4 + $0xa8] sm:$0xff] %vm236_vm0, %v467_v41  ;;  %v472_v47 = vmax.f32 %v424_v42, 0.0  ;;  %v416_v48 = vadd.f32 %v769_v54, %v415_v46 }
  0xea   : > { %v627_v49 = vpop.f32.mrf.mxu0  ;;  %v643_v52 = vpop.f32.mrf.mxu1 }
  0xeb   : > { %488 = vst.msk [vmem:[%s777_s4 + $0x50] sm:$0xff] %vm236_vm0, %v456_v44  ;;  %v454_v50 = vmax.f32 %v352_v45, 0.0  ;;  %v363_v51 = vadd.f32 %v627_v49, %v769_v54  ;;  %504 = vst.msk [vmem:[%s777_s4 + $0xd0] sm:$0xff] %vm236_vm0, %v472_v47  ;;  %v470_v53 = vmax.f32 %v416_v48, 0.0  ;;  %v427_v55 = vadd.f32 %v643_v52, %v769_v54 }
  0xec   : > { %v354_v56 = vpop.f32.mrf.mxu0  ;;  %v418_v59 = vpop.f32.mrf.mxu1 }
  0xed   : > { %486 = vst.msk [vmem:[%s777_s4 + $0x40] sm:$0xff] %vm236_vm0, %v454_v50  ;;  %v457_v57 = vmax.f32 %v363_v51, 0.0  ;;  %v355_v58 = vadd.f32 %v769_v54, %v354_v56  ;;  %502 = vst.msk [vmem:[%s777_s4 + $0xc0] sm:$0xff] %vm236_vm0, %v470_v53  ;;  %v473_v60 = vmax.f32 %v427_v55, 0.0  ;;  %v419_v61 = vadd.f32 %v769_v54, %v418_v59 }
  0xee   : > { %v630_v62 = vpop.f32.mrf.mxu0  ;;  %v646_v1 = vpop.f32.mrf.mxu1 }
  0xef   : > { %489 = vst.msk [vmem:[%s777_s4 + $0x58] sm:$0xff] %vm236_vm0, %v457_v57  ;;  %v455_v63 = vmax.f32 %v355_v58, 0.0  ;;  %v376_v0 = vadd.f32 %v630_v62, %v769_v54  ;;  %505 = vst.msk [vmem:[%s777_s4 + $0xd8] sm:$0xff] %vm236_vm0, %v473_v60  ;;  %v471_v2 = vmax.f32 %v419_v61, 0.0  ;;  %v440_v3 = vadd.f32 %v646_v1, %v769_v54 }
  0xf0   : > { %v367_v4 = vpop.f32.mrf.mxu0  ;;  %v431_v7 = vpop.f32.mrf.mxu1 }
  0xf1   : > { %487 = vst.msk [vmem:[%s777_s4 + $0x48] sm:$0xff] %vm236_vm0, %v455_v63  ;;  %v460_v5 = vmax.f32 %v376_v0, 0.0  ;;  %v368_v6 = vadd.f32 %v769_v54, %v367_v4  ;;  %503 = vst.msk [vmem:[%s777_s4 + $0xc8] sm:$0xff] %vm236_vm0, %v471_v2  ;;  %v476_v8 = vmax.f32 %v440_v3, 0.0  ;;  %v432_v9 = vadd.f32 %v769_v54, %v431_v7 }
  0xf2   : > { %v631_v10 = vpop.f32.mrf.mxu0  ;;  %v647_v13 = vpop.f32.mrf.mxu1 }
  0xf3   : > { %492 = vst.msk [vmem:[%s777_s4 + $0x70] sm:$0xff] %vm236_vm0, %v460_v5  ;;  %v458_v11 = vmax.f32 %v368_v6, 0.0  ;;  %v379_v12 = vadd.f32 %v631_v10, %v769_v54  ;;  %508 = vst.msk [vmem:[%s777_s4 + $0xf0] sm:$0xff] %vm236_vm0, %v476_v8  ;;  %v474_v14 = vmax.f32 %v432_v9, 0.0  ;;  %v443_v15 = vadd.f32 %v647_v13, %v769_v54 }
  0xf4   : > { %v370_v16 = vpop.f32.mrf.mxu0  ;;  %v434_v19 = vpop.f32.mrf.mxu1 }
  0xf5   : > { %490 = vst.msk [vmem:[%s777_s4 + $0x60] sm:$0xff] %vm236_vm0, %v458_v11  ;;  %v461_v17 = vmax.f32 %v379_v12, 0.0  ;;  %v371_v18 = vadd.f32 %v769_v54, %v370_v16  ;;  %506 = vst.msk [vmem:[%s777_s4 + $0xe0] sm:$0xff] %vm236_vm0, %v474_v14  ;;  %v477_v20 = vmax.f32 %v443_v15, 0.0  ;;  %v435_v21 = vadd.f32 %v769_v54, %v434_v19 }
  0xf7   : > { %493 = vst.msk [vmem:[%s777_s4 + $0x78] sm:$0xff] %vm236_vm0, %v461_v17  ;;  %v459_v22 = vmax.f32 %v371_v18, 0.0  ;;  %509 = vst.msk [vmem:[%s777_s4 + $0xf8] sm:$0xff] %vm236_vm0, %v477_v20  ;;  %v475_v23 = vmax.f32 %v435_v21, 0.0 }
  0xf9   : > { %491 = vst.msk [vmem:[%s777_s4 + $0x68] sm:$0xff] %vm236_vm0, %v459_v22  ;;  %507 = vst.msk [vmem:[%s777_s4 + $0xe8] sm:$0xff] %vm236_vm0, %v475_v23 }
  0xfa PF: > { %s13_s12 = sadd.s32 1, %s666_s12  }
  0xfb   : > { %p10_p4 = scmp.ge.s32.totalorder %s13_s12, 4  }
  0xfd   :  { %12 = sbr.rel (!%p10_p4) target bundleno = 1 (0x1), region = 62 }

// kernel: vit_encoder_forward.3
= control target key start
LH: loop header
LB: loop body
LE: loop exit
PB: predicated region body
PF: predicated region fallthrough
CT: control target
= control target key end

     0   :  { %s2984_s0 = inlined_call_operand.vmem [shape: f32[2,16,512], index: 0, kind: input, shape index: {}]   ;;  %s2985_s1 = inlined_call_operand.vmem [shape: f32[512,32], index: 1, kind: input, shape index: {}]   ;;  %s2986_s2 = inlined_call_operand.vmem [shape: f32[1,32], index: 2, kind: input, shape index: {}]   ;;  %s2987_s3 = inlined_call_operand.vmem [shape: f32[16,32], index: 3, kind: input, shape index: {}]   ;;  %s2988_s4 = inlined_call_operand.vmem [shape: f32[2,1,32], index: 4, kind: input, shape index: {}]   ;;  %s2989_s5 = inlined_call_operand.vmem [shape: f32[2,1,32], index: 5, kind: input, shape index: {}]   ;;  %s2990_s6 = inlined_call_operand.vmem [shape: f32[2,32,96], index: 6, kind: input, shape index: {}]   ;;  %s2991_s7 = inlined_call_operand.vmem [shape: f32[2,32,32], index: 7, kind: input, shape index: {}]   ;;  %s2992_s8 = inlined_call_operand.vmem [shape: f32[2,1,32], index: 8, kind: input, shape index: {}]   ;;  %s2993_s9 = inlined_call_operand.vmem [shape: f32[2,1,32], index: 9, kind: input, shape index: {}]   ;;  %s2994_s10 = inlined_call_operand.vmem [shape: f32[2,1,32], index: 10, kind: input, shape index: {}]   ;;  %s2995_s11 = inlined_call_operand.vmem [shape: f32[2,32,64], index: 11, kind: input, shape index: {}]   ;;  %s2996_s12 = inlined_call_operand.vmem [shape: f32[2,1,64], index: 12, kind: input, shape index: {}]   ;;  %s2997_s13 = inlined_call_operand.vmem [shape: f32[2,64,32], index: 13, kind: input, shape index: {}]   ;;  %s2998_s14 = inlined_call_operand.vmem [shape: f32[2,1,32], index: 14, kind: input, shape index: {}]   ;;  %s2999_s15 = inlined_call_operand.vmem [shape: f32[1,32], index: 15, kind: input, shape index: {}]   ;;  %s3000_s16 = inlined_call_operand.vmem [shape: f32[1,32], index: 16, kind: input, shape index: {}]   ;;  %s3001_s17 = inlined_call_operand.vmem [shape: f32[32,32], index: 17, kind: input, shape index: {}]   ;;  %s3002_s18 = inlined_call_operand.vmem [shape: f32[1,32], index: 18, kind: input, shape index: {}]   ;;  %s3003_s19 = inlined_call_operand.hbm [shape: f32[2,16,32], index: 19, kind: output, shape index: {}]  }
   0x1   :  { %3022 = sst [smem:[#allocation19_spill]] %s2984_s0 }
   0x2   :  { %3023 = sst [smem:[#allocation20_spill]] %s2985_s1 }
   0x3   :  { %3024 = sst [smem:[#allocation21_spill]] %s2986_s2 }
   0x4   :  { %3025 = sst [smem:[#allocation22_spill]] %s2987_s3 }
   0x5   :  { %3026 = sst [smem:[#allocation23_spill]] %s2990_s6 }
   0x6   :  { %3027 = sst [smem:[#allocation24_spill]] %s2991_s7 }
   0x7   :  { %3028 = sst [smem:[#allocation25_spill]] %s2999_s15 }
   0x8   :  { %3029 = sst [smem:[#allocation26_spill]] %s3000_s16 }
   0x9   :  { %3030 = sst [smem:[#allocation27_spill]] %s3001_s17 }
   0xa   :  { %3031 = sst [smem:[#allocation28_spill]] %s3002_s18 }
   0xb   :  { %3032 = sst [smem:[#allocation29_spill]] %s3003_s19 }
   0xc   :  { %24 = vsyncpa [#allocation4], 0 }
   0xd   :  { %26 = vsyncpa [#allocation4 + $0x1], 0  ;;  %s2404_s0 = smov 0   ;;  %s2406_s30 = smov 0  }
   0xe   :  { %s2408_s20 = smov 0   ;;  %s2410_s21 = smov 0  }
   0xf   :  { %s2412_s1 = smov 0   ;;  %s2414_s22 = smov 0  }
  0x10   :  { %s2416_s2 = smov 0   ;;  %s2418_s23 = smov 0  }
  0x11 LB: > { %3033 = sst [smem:[#allocation6_spill]] %s2261_s0  ;;  %s1891_s24 = sadd.s32 4294967295, %s2289_s23   ;;  %s2289_s23 = sphi %s2418_s23, %s32_s23   ;;  %s2285_s2 = sphi %s2416_s2, %s3078_s2   ;;  %s2281_s22 = sphi %s2414_s22, %s3077_s22   ;;  %s2277_s1 = sphi %s2412_s1, %s3076_s1   ;;  %s2273_s21 = sphi %s2410_s21, %s3075_s21   ;;  %s2269_s20 = sphi %s2408_s20, %s3074_s20   ;;  %s2265_s30 = sphi %s2406_s30, %s3073_s30   ;;  %s2261_s0 = sphi %s2404_s0, %s3072_s0  }
  0x12   : > { %3034 = sst [smem:[#allocation7_spill]] %s2265_s30  ;;  %s1892_s25 = sadd.s32 4294967294, %s2289_s23  }
  0x13   : > { %3035 = sst [smem:[#allocation8_spill]] %s2269_s20  ;;  %s41_s3 = sadd.s32 1, %s2281_s22 }
  0x14   : > { %3036 = sst [smem:[#allocation9_spill]] %s2277_s1  ;;  %p42_p0 = scmp.ge.s32.totalorder %s41_s3, 2 }
  0x15   : > { %3037 = sst [smem:[#allocation10_spill]] %s2281_s22  ;;  %s44_s26 = sadd.s32 1, %s2285_s2 }
  0x16   : > { %3038 = sst [smem:[#allocation11_spill]] %s2285_s2  ;;  %p520_p1 = scmp.ne.s32.totalorder %s2269_s20, %s2265_s30 }
  0x17   : > { %3039 = sst [smem:[#allocation12_spill]] %s2289_s23  ;;  %p521_p2 = scmp.eq.s32.totalorder %s1891_s24, 3 }
  0x18   : > { %s3080_s3 = smov (%p42_p0, %s41_s3), 0  ;;  %s3082_s26 = smov (!%p42_p0, %s44_s26), %s2285_s2 }
  0x19   : > { %3040 = sst [smem:[#allocation13_spill]] %s3080_s3  ;;  %p2453_p3 = por %p521_p2, %p520_p1 }
  0x1a   : > { %p526_p4 = scmp.ne.s32.totalorder %s2265_s30, %s2261_s0  ;;  %p46_p5 = scmp.ge.s32.totalorder %s3082_s26, 2 }
  0x1b   : > { %s3041_s27 = scalar_select %p2453_p3, 1, 0 }
  0x1c   : > { %p527_p6 = scmp.eq.s32.totalorder %s1892_s25, 3  ;;  %p1895_p7 = scmp.ge.s32.totalorder %s2289_s23, 1 }
  0x1d   : > { %3042 = sst [smem:[#allocation14_spill]] %s3041_s27  ;;  %p648_p8 = scmp.lt.s32.totalorder %s2289_s23, 5 }
  0x1e   : > { %s3084_s26 = smov (%p46_p5, %s3082_s26), 0  ;;  %p2463_p9 = por %p527_p6, %p526_p4 }
  0x1f   : > { %3043 = sst [smem:[#allocation15_spill]] %s3084_s26  ;;  %p649_p10 = pnand %p1895_p7, %p648_p8 }
  0x20   : > { %s3044_s28 = scalar_select %p2463_p9, 1, 0 }
  0x21   : > { %s507_s29 = ssub.s32 %s2285_s2, %s3084_s26  ;;  %s510_s24 = sadd.s32 1, %s2269_s20 }
  0x22   : > { %3045 = sst [smem:[#allocation16_spill]] %s3044_s28  ;;  %p508_p11 = scmp.eq.s32.totalorder %s507_s29, 0 }
  0x23   : > { %652 = sbr.rel (%p649_p10) target bundleno = 3244 (0xcac), region = 96 }
  0x24   : > { %s2471_s3 = scalar_select %p508_p11, %s2269_s20, %s510_s24  }
  0x26   : > { %3046 = sst [smem:[#allocation17_spill]] %s2471_s3 }
  0x28   : > { %s3011_s25 = sand.u32 1, %s2265_s30   ;;  %p745_p12 = scmp.lt.s32.totalorder %s2277_s1, 1 }
  0x29   : > { %s1896_s22 = sshll.u32 %s3011_s25, 4  ;;  %p750_p13 = scmp.lt.s32.totalorder %s2273_s21, 1 }
  0x2a   : > { %s746_s0 = scalar_select %p745_p12, %s2277_s1, 1 }
  0x2b   : > { %s2480_s28 = scalar_select %p750_p13, %s2273_s21, 1 }
  0x2c   : > { %s1934_s29 = sshll.u32 %s746_s0, 6  ;;  %s3047_s2 = sld [smem:[#allocation19_spill]] }
  0x2d   : > { %s1935_s1 = sshll.u32 %s2480_s28, 5  ;;  %s3048_s6 = sld [smem:[#allocation23_spill]] }
  0x2e   : > { %s3049_s7 = sld [smem:[#allocation24_spill]]  ;;  %s771_s19 = scalar_lea.vmem %s2993_s9, %s2480_s28 }
  0x2f   : > { %s774_s23 = scalar_lea.vmem %s2994_s10, %s2480_s28  ;;  %s2537_s27 = scalar_lea.vmem [#allocation3], %s1896_s22 }
  0x30   : > { %p1907_p0 = scmp.ne.s32.totalorder %s2273_s21, 0 }
  0x31   : > { %s3051_s18 = sld [smem:[#allocation20_spill]] (!%p1907_p0) }
  0x32   : > { %s2485_s3 = scalar_lea.vmem %s3047_s2, %s1934_s29  ;;  %795 = sbr.rel (%p1907_p0) target bundleno = 299 (0x12b), region = 100 }
  0x33   : > { %s2499_s15 = scalar_lea.vmem %s3048_s6, %s1935_s1  ;;  %s2521_s6 = scalar_lea.vmem %s2995_s11, %s1935_s1 }
  0x34   : > { %s2504_s26 = scalar_lea.vmem %s3049_s7, %s1935_s1  ;;  %s3052_s0 = sld [smem:[#allocation21_spill]] (!%p1907_p0) }
  0x35   : > { %3050 = sst [smem:[#allocation18_spill]] %s2504_s26  ;;  %s1938_s26 = sshll.u32 %s2480_s28, 6 }
  0x36   : > { %s2531_s20 = scalar_lea.vmem %s2997_s13, %s1938_s26  ;;  %s3053_s26 = sld [smem:[#allocation22_spill]] (!%p1907_p0) }
  0x37   : > { %v838_v0 = vld [vmem:[%s3051_s18 + $0xf0] sm:$0xff]  ;;  %v839_v1 = vld [vmem:[%s3051_s18 + $0xf8] sm:$0xff]  ;;  %v836_v11 = vld [vmem:[%s3051_s18 + $0xe0] sm:$0xff]  ;;  %vm997_vm0 = vcmask 261120  }
  0x38   : > { %v870_v2 = vld [vmem:[%s3051_s18 + $0x1f0] sm:$0xff]  ;;  %v887_v3 = vpack.c.bf16 %v839_v1, %v838_v0  ;;  %v871_v4 = vld [vmem:[%s3051_s18 + $0x1f8] sm:$0xff]  ;;  %v837_v13 = vld [vmem:[%s3051_s18 + $0xe8] sm:$0xff] }
  0x39   : > { %v822_v5 = vld [vmem:[%s3051_s18 + $0x70] sm:$0xff]  ;;  %v823_v6 = vld [vmem:[%s3051_s18 + $0x78] sm:$0xff]  ;;  %v903_v7 = vpack.c.bf16 %v871_v4, %v870_v2  ;;  %v868_v14 = vld [vmem:[%s3051_s18 + $0x1e0] sm:$0xff]  ;;  %v886_v16 = vpack.c.bf16 %v837_v13, %v836_v11 }
  0x3a   : > { %v879_v8 = vpack.c.bf16 %v823_v6, %v822_v5  ;;  %v854_v9 = vld [vmem:[%s3051_s18 + $0x170] sm:$0xff]  ;;  %v855_v10 = vld [vmem:[%s3051_s18 + $0x178] sm:$0xff]  ;;  %1940 = vmatprep.subr.bf16.mxu0 %v887_v3  ;;  %v869_v15 = vld [vmem:[%s3051_s18 + $0x1e8] sm:$0xff] }
  0x3b   : > { %v895_v12 = vpack.c.bf16 %v855_v10, %v854_v9  ;;  %1962 = vmatprep.subr.bf16.mxu1 %v903_v7  ;;  %v902_v17 = vpack.c.bf16 %v869_v15, %v868_v14  ;;  %v820_v18 = vld [vmem:[%s3051_s18 + $0x60] sm:$0xff]  ;;  %v821_v19 = vld [vmem:[%s3051_s18 + $0x68] sm:$0xff]  ;;  %v834_v23 = vld [vmem:[%s3051_s18 + $0xd0] sm:$0xff] }
  0x3c   : > { %1941 = vmatpush3.bf16.msra.mxu0 %v879_v8  ;;  %v852_v20 = vld [vmem:[%s3051_s18 + $0x160] sm:$0xff]  ;;  %v878_v21 = vpack.c.bf16 %v821_v19, %v820_v18  ;;  %v853_v22 = vld [vmem:[%s3051_s18 + $0x168] sm:$0xff]  ;;  %v835_v24 = vld [vmem:[%s3051_s18 + $0xd8] sm:$0xff] }
  0x3d   : > { %1963 = vmatpush3.bf16.msra.mxu1 %v895_v12  ;;  %1942 = vmatprep.subr.bf16.mxu0 %v886_v16  ;;  %v894_v25 = vpack.c.bf16 %v853_v22, %v852_v20  ;;  %v885_v26 = vpack.c.bf16 %v835_v24, %v834_v23  ;;  %v866_v27 = vld [vmem:[%s3051_s18 + $0x1d0] sm:$0xff]  ;;  %v867_v28 = vld [vmem:[%s3051_s18 + $0x1d8] sm:$0xff]  ;;  %v832_v35 = vld [vmem:[%s3051_s18 + $0xc0] sm:$0xff] }
  0x3e   : > { %1964 = vmatprep.subr.bf16.mxu1 %v902_v17  ;;  %v818_v29 = vld [vmem:[%s3051_s18 + $0x50] sm:$0xff]  ;;  %v901_v30 = vpack.c.bf16 %v867_v28, %v866_v27  ;;  %v819_v31 = vld [vmem:[%s3051_s18 + $0x58] sm:$0xff]  ;;  %v833_v36 = vld [vmem:[%s3051_s18 + $0xc8] sm:$0xff] }
  0x3f   : > { %v850_v32 = vld [vmem:[%s3051_s18 + $0x150] sm:$0xff]  ;;  %v851_v33 = vld [vmem:[%s3051_s18 + $0x158] sm:$0xff]  ;;  %v877_v34 = vpack.c.bf16 %v819_v31, %v818_v29  ;;  %v864_v37 = vld [vmem:[%s3051_s18 + $0x1c0] sm:$0xff]  ;;  %v884_v39 = vpack.c.bf16 %v833_v36, %v832_v35 }
  0x40   : > { %1943 = vmatpush3.bf16.msra.mxu0 %v878_v21  ;;  %v893_v38 = vpack.c.bf16 %v851_v33, %v850_v32  ;;  %v865_v40 = vld [vmem:[%s3051_s18 + $0x1c8] sm:$0xff]  ;;  %v816_v41 = vld [vmem:[%s3051_s18 + $0x40] sm:$0xff]  ;;  %v830_v46 = vld [vmem:[%s3051_s18 + $0xb0] sm:$0xff] }
  0x41   : > { %1965 = vmatpush3.bf16.msra.mxu1 %v894_v25  ;;  %1944 = vmatprep.subr.bf16.mxu0 %v885_v26  ;;  %v817_v42 = vld [vmem:[%s3051_s18 + $0x48] sm:$0xff]  ;;  %v900_v43 = vpack.c.bf16 %v865_v40, %v864_v37  ;;  %v848_v44 = vld [vmem:[%s3051_s18 + $0x140] sm:$0xff]  ;;  %v831_v47 = vld [vmem:[%s3051_s18 + $0xb8] sm:$0xff] }
  0x42   : > { %1966 = vmatprep.subr.bf16.mxu1 %v901_v30  ;;  %v849_v45 = vld [vmem:[%s3051_s18 + $0x148] sm:$0xff]  ;;  %v862_v48 = vld [vmem:[%s3051_s18 + $0x1b0] sm:$0xff]  ;;  %v863_v49 = vld [vmem:[%s3051_s18 + $0x1b8] sm:$0xff]  ;;  %v876_v50 = vpack.c.bf16 %v817_v42, %v816_v41  ;;  %v883_v52 = vpack.c.bf16 %v831_v47, %v830_v46 }
  0x43   : > { %v892_v51 = vpack.c.bf16 %v849_v45, %v848_v44  ;;  %v814_v53 = vld [vmem:[%s3051_s18 + $0x30] sm:$0xff]  ;;  %v815_v54 = vld [vmem:[%s3051_s18 + $0x38] sm:$0xff]  ;;  %v899_v56 = vpack.c.bf16 %v863_v49, %v862_v48  ;;  %v828_v58 = vld [vmem:[%s3051_s18 + $0xa0] sm:$0xff] }
  0x44   : > { %1945 = vmatpush3.bf16.msra.mxu0 %v877_v34  ;;  %v846_v55 = vld [vmem:[%s3051_s18 + $0x130] sm:$0xff]  ;;  %v847_v57 = vld [vmem:[%s3051_s18 + $0x138] sm:$0xff]  ;;  %v829_v59 = vld [vmem:[%s3051_s18 + $0xa8] sm:$0xff]  ;;  %v875_v62 = vpack.c.bf16 %v815_v54, %v814_v53 }
  0x45   : > { %1967 = vmatpush3.bf16.msra.mxu1 %v893_v38  ;;  %1946 = vmatprep.subr.bf16.mxu0 %v884_v39  ;;  %v860_v60 = vld [vmem:[%s3051_s18 + $0x1a0] sm:$0xff]  ;;  %v861_v61 = vld [vmem:[%s3051_s18 + $0x1a8] sm:$0xff]  ;;  %v891_v63 = vpack.c.bf16 %v847_v57, %v846_v55  ;;  %v882_v0 = vpack.c.bf16 %v829_v59, %v828_v58  ;;  %v826_v6 = vld [vmem:[%s3051_s18 + $0x90] sm:$0xff] }
  0x46   : > { %1968 = vmatprep.subr.bf16.mxu1 %v900_v43  ;;  %v812_v1 = vld [vmem:[%s3051_s18 + $0x20] sm:$0xff]  ;;  %v813_v2 = vld [vmem:[%s3051_s18 + $0x28] sm:$0xff]  ;;  %v898_v4 = vpack.c.bf16 %v861_v61, %v860_v60  ;;  %v827_v7 = vld [vmem:[%s3051_s18 + $0x98] sm:$0xff] }
  0x47   : > { %v844_v3 = vld [vmem:[%s3051_s18 + $0x120] sm:$0xff]  ;;  %v845_v5 = vld [vmem:[%s3051_s18 + $0x128] sm:$0xff]  ;;  %v858_v8 = vld [vmem:[%s3051_s18 + $0x190] sm:$0xff]  ;;  %v874_v11 = vpack.c.bf16 %v813_v2, %v812_v1  ;;  %v881_v16 = vpack.c.bf16 %v827_v7, %v826_v6 }
  0x48   : > { %1947 = vmatpush3.bf16.msra.mxu0 %v876_v50  ;;  %v859_v9 = vld [vmem:[%s3051_s18 + $0x198] sm:$0xff]  ;;  %v810_v10 = vld [vmem:[%s3051_s18 + $0x10] sm:$0xff]  ;;  %v890_v15 = vpack.c.bf16 %v845_v5, %v844_v3  ;;  %v824_v17 = vld [vmem:[%s3051_s18 + $0x80] sm:$0xff] }
  0x49   : > { %1969 = vmatpush3.bf16.msra.mxu1 %v892_v51  ;;  %1948 = vmatprep.subr.bf16.mxu0 %v883_v52  ;;  %v811_v12 = vld [vmem:[%s3051_s18 + $0x18] sm:$0xff]  ;;  %v842_v13 = vld [vmem:[%s3051_s18 + $0x110] sm:$0xff]  ;;  %v797_v18 = vld [vmem:[%s2485_s3 + $0x8] sm:$0xff]  ;;  %v897_v20 = vpack.c.bf16 %v859_v9, %v858_v8 }
  0x4a   : > { %1970 = vmatprep.subr.bf16.mxu1 %v899_v56  ;;  %v843_v14 = vld [vmem:[%s3051_s18 + $0x118] sm:$0xff]  ;;  %v801_v19 = vld [vmem:[%s2485_s3 + $0x28] sm:$0xff]  ;;  %v856_v25 = vld [vmem:[%s3051_s18 + $0x180] sm:$0xff]  ;;  %v873_v28 = vpack.c.bf16 %v811_v12, %v810_v10 }
  0x4b   : > { %v825_v21 = vld [vmem:[%s3051_s18 + $0x88] sm:$0xff]  ;;  %v805_v22 = vpack.c.bf16 %v801_v19, %v797_v18  ;;  %v799_v23 = vld [vmem:[%s2485_s3 + $0x18] sm:$0xff]  ;;  %v889_v29 = vpack.c.bf16 %v843_v14, %v842_v13  ;;  %v808_v31 = vld [vmem:[%s3051_s18] sm:$0xff] }
  0x4c   : > { %1949 = vmatpush3.bf16.msra.mxu0 %v875_v62  ;;  %v803_v24 = vld [vmem:[%s2485_s3 + $0x38] sm:$0xff]  ;;  %v857_v26 = vld [vmem:[%s3051_s18 + $0x188] sm:$0xff]  ;;  %v880_v30 = vpack.c.bf16 %v825_v21, %v824_v17  ;;  %v840_v34 = vld [vmem:[%s3051_s18 + $0x100] sm:$0xff] }
  0x4d   : > { %1971 = vmatpush3.bf16.msra.mxu1 %v891_v63  ;;  %1950 = vmatprep.subr.bf16.mxu0 %v882_v0  ;;  %v807_v27 = vpack.c.bf16 %v803_v24, %v799_v23  ;;  %v809_v32 = vld [vmem:[%s3051_s18 + $0x8] sm:$0xff]  ;;  %v896_v33 = vpack.c.bf16 %v857_v26, %v856_v25  ;;  %v796_v37 = vld [vmem:[%s2485_s3] sm:$0xff]  ;;  %v798_v40 = vld [vmem:[%s2485_s3 + $0x10] sm:$0xff] }
  0x4e   : > { %1972 = vmatprep.subr.bf16.mxu1 %v898_v4  ;;  %943 = vmatprep.mubr.bf16.mxu0 %v805_v22  ;;  %v841_v35 = vld [vmem:[%s3051_s18 + $0x108] sm:$0xff]  ;;  %v872_v36 = vpack.c.bf16 %v809_v32, %v808_v31  ;;  %v800_v38 = vld [vmem:[%s2485_s3 + $0x20] sm:$0xff]  ;;  %v802_v41 = vld [vmem:[%s2485_s3 + $0x30] sm:$0xff] }
  0x4f   : > { %984 = vmatprep.mubr.bf16.mxu1 %v807_v27  ;;  %v888_v39 = vpack.c.bf16 %v841_v35, %v840_v34  ;;  %v804_v42 = vpack.c.bf16 %v800_v38, %v796_v37  ;;  %v806_v43 = vpack.c.bf16 %v802_v41, %v798_v40  ;;  %v1908_v46 = vld [vmem:[%s3052_s0] ss:$0 sm:$0xff]  ;;  %v994_v62 = vld [vmem:[%s3053_s26 + $0x8] sm:$0xff] }
  0x50   : > { %1951 = vmatpush3.bf16.msra.mxu0 %v874_v11  ;;  %v993_v54 = vld [vmem:[%s3053_s26] sm:$0xff] }
  0x51   : > { %1973 = vmatpush3.bf16.msra.mxu1 %v890_v15  ;;  %1952 = vmatprep.subr.bf16.mxu0 %v881_v16 }
  0x52   : > { %1974 = vmatprep.subr.bf16.mxu1 %v897_v20 }
  0x54   : > { %1953 = vmatpush3.bf16.msra.mxu0 %v873_v28 }
  0x55   : > { %1975 = vmatpush3.bf16.msra.mxu1 %v889_v29  ;;  %1954 = vmatprep.subr.bf16.mxu0 %v880_v30 }
  0x56   : > { %1976 = vmatprep.subr.bf16.mxu1 %v896_v33 }
  0x58   : > { %1955 = vmatpush3.bf16.msra.mxu0 %v872_v36 }
  0x59   : > { %1977 = vmatpush3.bf16.msra.mxu1 %v888_v39 }
  0x5b   : > { %944 = vmatmul.mubr.bf16.vlgmr.msra.gmra.mxu0 %v804_v42 }
  0x5c   : > { %985 = vmatmul.mubr.bf16.vlgmr.msra.gmra.mxu1 %v806_v43 }
 0x11b   : > { %v1956_v44 = vpop.f32.mrf.mxu0 }
 0x11c   : > { %v1978_v45 = vpop.f32.mrf.mxu1 }
 0x11d   : > { %v1957_v47 = vpop.f32.mrf.mxu0 }
 0x11e   : > { %v1958_v48 = vadd.f32 %v1957_v47, %v1956_v44  ;;  %v1979_v49 = vpop.f32.mrf.mxu1 }
 0x11f   : > { %v1959_v50 = vpop.f32.mrf.mxu0  ;;  %v1980_v52 = vadd.f32 %v1979_v49, %v1978_v45 }
 0x120   : > { %v946_v51 = vadd.f32 %v1958_v48, %v1908_v46  ;;  %v1981_v53 = vpop.f32.mrf.mxu1 }
 0x121   : > { %v1960_v55 = vpop.f32.mrf.mxu0 }
 0x122   : > { %v987_v56 = vadd.f32 %v1980_v52, %v946_v51  ;;  %v1961_v57 = vadd.f32 %v1960_v55, %v1959_v50  ;;  %v1982_v58 = vpop.f32.mrf.mxu1 }
 0x123   : > { %v1983_v61 = vadd.f32 %v1982_v58, %v1981_v53 }
 0x124   : > { %v995_v59 = vadd.f32 %v993_v54, %v987_v56  ;;  %v949_v60 = vadd.f32 %v1961_v57, %v1908_v46 }
 0x126   : > { %998 = vst.msk [vmem:[#allocation2] sm:$0xff] %vm997_vm0, %v995_v59  ;;  %v990_v63 = vadd.f32 %v1983_v61, %v949_v60 }
 0x128   : > { %v996_v0 = vadd.f32 %v994_v62, %v990_v63 }
 0x12a   : > { %999 = vst.msk [vmem:[#allocation2 + $0x8] sm:$0xff] %vm997_vm0, %v996_v0 }
 0x12b PF: > { %vm1004_vm1 = vcmask 261120   ;;  %v1051_v15 = vld [vmem:[%s2499_s15 + $0x10] sm:$0xff]  ;;  %v1052_v16 = vld [vmem:[%s2499_s15 + $0x18] sm:$0xff]  ;;  %v1049_v17 = vld [vmem:[%s2499_s15] sm:$0xff]  ;;  %v2291_v18 = vmov 0.0   ;;  %vm2292_vm2 = vmmov 0   ;;  %s3054_s30 = scalar_lea.vmem %s2988_s4, %s2480_s28  ;;  %s3055_s1 = scalar_lea.vmem %s2989_s5, %s2480_s28 }
 0x12c   : > { %2009 = vmatprep.subr.bf16.mxu0 %v2291_v18  ;;  %v1054_v19 = vpack.c.bf16 %v1052_v16, %v1051_v15  ;;  %v1050_v20 = vld [vmem:[%s2499_s15 + $0x8] sm:$0xff]  ;;  %2013 = vmatprep.mubr.msk.bf16.mxu0 %vm2292_vm2, %v2291_v18  ;;  %v1909_v30 = vld [vmem:[%s3054_s30] ss:$0 sm:$0xff]  ;;  %s2293_s16 = smov 80   ;;  %s2294_s17 = smov 96   ;;  %vm1103_vm3 = vcmask 130048  }
 0x12d   : > { %v2749_v1 = vld [vmem:[#allocation2] sm:$0xff]  ;;  %2017 = vmatprep.subr.bf16.mxu1 %v2291_v18  ;;  %2019 = vmatprep.mubr.msk.bf16.mxu1 %vm2292_vm2, %v2291_v18  ;;  %v1053_v21 = vpack.c.bf16 %v1050_v20, %v1049_v17  ;;  %s2295_s0 = smov 112   ;;  %s2296_s3 = smov 64   ;;  %vm1536_vm4 = vcmask 523264  }
 0x12e   : > { %v1005_v3 = vsel %vm1004_vm1, %v2749_v1, 0.0  ;;  %2010 = vmatpush3.bf16.msra.mxu0 %v1054_v19  ;;  %v1910_v34 = vld [vmem:[%s3055_s1] ss:$0 sm:$0xff]  ;;  %s2297_s2 = smov 48   ;;  %s3056_s29 = sld [smem:[#allocation18_spill]] }
 0x12f   : > { %1006 = vadd.xlane.f32.xlu0 %v1005_v3  ;;  %2011 = vmatprep.subr.bf16.mxu0 %v2291_v18  ;;  %s2298_s25 = smov 16   ;;  %s3057_s30 = scalar_lea.vmem %s2992_s8, %s2480_s28 }
 0x130   : > { %p1924_p1 = scmp.ne.s32.totalorder %s2273_s21, 1 }
 0x131   : > { %v2751_v2 = vld [vmem:[#allocation2 + $0x8] sm:$0xff]  ;;  %s3061_s7 = sld [smem:[#allocation25_spill]] (!%p1924_p1) }
 0x132   : > { %v1008_v4 = vsel %vm1004_vm1, %v2751_v2, 0.0  ;;  %2012 = vmatpush3.bf16.msra.mxu0 %v1053_v21 }
 0x133   : > { %1009 = vadd.xlane.f32.xlu0 %v1008_v4  ;;  %2023 = vmatprep.subr.bf16.mxu0 %v2291_v18 }
 0x1b8   : > { %v1007_v5 = vpop.xlane.xlu0 %1006 }
 0x1b9   : > { %v1012_v6 = vmul.f32 0.03125, %v1007_v5 }
 0x1bb   : > { %v1014_v7 = vsub.f32 %v2749_v1, %v1012_v6 }
 0x1bc   : > { %v1010_v8 = vpop.xlane.xlu0 %1009 }
 0x1bd   : > { %v1013_v9 = vmul.f32 0.03125, %v1010_v8  ;;  %v1016_v10 = vmul.f32 %v1014_v7, %v1014_v7 }
 0x1bf   : > { %v1015_v11 = vsub.f32 %v2751_v2, %v1013_v9  ;;  %v1018_v12 = vsel %vm1004_vm1, %v1016_v10, 0.0 }
 0x1c0   : > { %1019 = vadd.xlane.f32.xlu1 %v1018_v12 }
 0x1c1   : > { %v1017_v13 = vmul.f32 %v1015_v11, %v1015_v11 }
 0x1c3   : > { %v1021_v14 = vsel %vm1004_vm1, %v1017_v13, 0.0 }
 0x1c4   : > { %1022 = vadd.xlane.f32.xlu1 %v1021_v14 }
 0x249   : > { %v1020_v22 = vpop.xlane.xlu1 %1019 }
 0x24a   : > { %v1024_v23 = vmul.f32 0.03125, %v1020_v22 }
 0x24c   : > { %v1026_v24 = vadd.f32 1e-05, %v1024_v23 }
 0x24d   : > { %v1023_v25 = vpop.xlane.xlu1 %1022 }
 0x24e   : > { %2165 = vrsqrt.f32 %v1026_v24  ;;  %v1025_v26 = vmul.f32 0.03125, %v1023_v25 }
 0x250   : > { %v1027_v27 = vadd.f32 1e-05, %v1025_v26 }
 0x252   : > { %2167 = vrsqrt.f32 %v1027_v27 }
 0x25b   : > { %v2166_v28 = vpop.eup %2165 }
 0x25c   : > { %v1030_v29 = vmul.f32 %v2166_v28, %v1014_v7 }
 0x25e   : > { %v1038_v33 = vmul.f32 %v1909_v30, %v1030_v29 }
 0x25f   : > { %v2168_v31 = vpop.eup %2167 }
 0x260   : > { %v1031_v32 = vmul.f32 %v2168_v31, %v1015_v11  ;;  %v1046_v36 = vadd.f32 %v1910_v34, %v1038_v33 }
 0x262   : > { %v1039_v35 = vmul.f32 %v1909_v30, %v1031_v32 }
 0x264   : > { %v1047_v37 = vadd.f32 %v1910_v34, %v1039_v35 }
 0x266   : > { %v1048_v38 = vpack.c.bf16 %v1047_v37, %v1046_v36  ;;  %v1355_v36 = vld [vmem:[%s3056_s29 + $0x10] sm:$0xff]  ;;  %v1356_v37 = vld [vmem:[%s3056_s29 + $0x18] sm:$0xff] }
 0x268   : > { %2014 = vmatmul.mubr.msk.bf16.vlgmr.msra.gmra.mxu0 %vm1004_vm1, %v1048_v38  ;;  %v1358_v38 = vpack.c.bf16 %v1356_v37, %v1355_v36 }
 0x269   : > { %2025 = vmatprep.mubr.msk.bf16.mxu0 %vm2292_vm2, %v2291_v18 }
 0x328   : > { %v1092_v39 = vpop.f32.mrf.mxu0 }
 0x32a   : > { %v2015_v40 = vpop.f32.mrf.mxu0 }
 0x32c   : > { %v1095_v41 = vpop.f32.mrf.mxu0 }
 0x32d   : > { %v2786_v42 = vpack.c.bf16 %v1095_v41, %v1092_v39  ;;  %v1353_v41 = vld [vmem:[%s3056_s29] sm:$0xff] }
 0x32e   : > { %v2016_v43 = vpop.f32.mrf.mxu0 }
 0x32f   : > { %1223 = vrot.lane.b32.xlu1 %v2786_v42, %s2293_s16  ;;  %1101 = vrot.lane.b32.xlu0 %v2786_v42, %s2294_s17  ;;  %s3058_s16 = scalar_lea.vmem %s2996_s12, %s2480_s28  ;;  %s3063_s17 = sld [smem:[#allocation28_spill]] (!%p1924_p1) }
 0x333   : > { %1221 = vrot.lane.b32.xlu1 %v2786_v42, %s2295_s0  ;;  %s3059_s0 = scalar_lea.vmem %s2998_s14, %s2480_s28 }
 0x3a1   : > { %v1102_v44 = vpop.permute.xlu0 %1101  ;;  %v1224_v46 = vpop.permute.xlu1 %1223 }
 0x3a2   : > { %v1108_v45 = vsel %vm1103_vm3, %v1102_v44, 0  ;;  %v1229_v47 = vsel %vm1103_vm3, %v1224_v46, 0 }
 0x3a3   : > { %2018 = vmatpush3.bf16.xpose.msra.mxu1 %v1108_v45 }
 0x3a4   : > { %2029 = vmatprep.subr.bf16.mxu1 %v2291_v18 }
 0x3a5   : > { %v1222_v48 = vpop.permute.xlu1 %1221 }
 0x3aa   : > { %2020 = vmatmul.mubr.msk.bf16.vlgmr.msra.gmra.mxu1 %vm1103_vm3, %v2786_v42 }
 0x3ab   : > { %2030 = vmatpush3.bf16.xpose.msra.mxu1 %v1229_v47  ;;  %2031 = vmatprep.mubr.msk.bf16.mxu1 %vm2292_vm2, %v2291_v18 }
 0x3ac   : > { %2041 = vmatprep.subr.bf16.mxu1 %v2291_v18 }
 0x3b2   : > { %2032 = vmatmul.mubr.msk.bf16.vlgmr.msra.gmra.mxu1 %vm1103_vm3, %v1222_v48 }
 0x3b3   : > { %2045 = vmatprep.mubr.msk.bf16.mxu1 %vm2292_vm2, %v2291_v18  ;;  %2042 = vmatpush3.bf16.msra.mxu1 %v1358_v38  ;;  %v1523_v38 = vld [vmem:[%s2531_s20 + $0x30] sm:$0xff] }
 0x3b4   : > { %2043 = vmatprep.subr.bf16.mxu1 %v2291_v18 }
 0x46a   : > { %v1144_v49 = vpop.f32.mrf.mxu1 }
 0x46b   : > { %v1151_v50 = vsel %vm1103_vm3, %v1144_v49, -inf }
 0x46c   : > { %1152 = vmax.xlane.f32.xlu1 %v1151_v50  ;;  %v2021_v51 = vpop.f32.mrf.mxu1 }
 0x46e   : > { %v1147_v52 = vpop.f32.mrf.mxu1 }
 0x46f   : > { %v1154_v53 = vsel %vm1103_vm3, %v1147_v52, -inf }
 0x470   : > { %1155 = vmax.xlane.f32.xlu0 %v1154_v53  ;;  %v2022_v54 = vpop.f32.mrf.mxu1 }
 0x472   : > { %v1265_v55 = vpop.f32.mrf.mxu1 }
 0x473   : > { %v1272_v56 = vsel %vm1103_vm3, %v1265_v55, -inf }
 0x474   : > { %1273 = vmax.xlane.f32.xlu0 %v1272_v56  ;;  %v2033_v57 = vpop.f32.mrf.mxu1 }
 0x475   : > { %v1916_v57 = vld [vmem:[%s3057_s30] ss:$0 sm:$0xff] }
 0x476   : > { %v1268_v58 = vpop.f32.mrf.mxu1 }
 0x477   : > { %v1275_v59 = vsel %vm1103_vm3, %v1268_v58, -inf }
 0x478   : > { %1276 = vmax.xlane.f32.xlu0 %v1275_v59  ;;  %v2034_v60 = vpop.f32.mrf.mxu1 }
 0x4f5   : > { %v1153_v61 = vpop.xlane.xlu1 %1152 }
 0x4f6   : > { %v1157_v62 = vsub.f32 %v1144_v49, %v1153_v61 }
 0x4f8   : > { %v1159_v63 = vmul.f32 1.442695, %v1157_v62 }
 0x4f9   : > { %v1156_v0 = vpop.xlane.xlu0 %1155 }
 0x4fa   : > { %2169 = vpow2.f32 %v1159_v63  ;;  %v1158_v3 = vsub.f32 %v1147_v52, %v1156_v0 }
 0x4fc   : > { %v1161_v4 = vmul.f32 1.442695, %v1158_v3 }
 0x4fd   : > { %v1274_v5 = vpop.xlane.xlu0 %1273 }
 0x4fe   : > { %2171 = vpow2.f32 %v1161_v4  ;;  %v1278_v6 = vsub.f32 %v1265_v55, %v1274_v5 }
 0x500   : > { %v1280_v7 = vmul.f32 1.442695, %v1278_v6 }
 0x501   : > { %v1277_v8 = vpop.xlane.xlu0 %1276 }
 0x502   : > { %2173 = vpow2.f32 %v1280_v7  ;;  %v1279_v9 = vsub.f32 %v1268_v58, %v1277_v8 }
 0x504   : > { %v1282_v10 = vmul.f32 1.442695, %v1279_v9 }
 0x506   : > { %2175 = vpow2.f32 %v1282_v10 }
 0x507   : > { %v2170_v11 = vpop.eup %2169 }
 0x508   : > { %v1163_v12 = vsel %vm1103_vm3, %v2170_v11, 0.0 }
 0x509   : > { %1164 = vadd.xlane.f32.xlu1 %v1163_v12 }
 0x50b   : > { %v2172_v13 = vpop.eup %2171 }
 0x50c   : > { %v1166_v14 = vsel %vm1103_vm3, %v2172_v13, 0.0 }
 0x50d   : > { %1167 = vadd.xlane.f32.xlu0 %v1166_v14  ;;  %v1459_v14 = vld [vmem:[%s2521_s6 + $0x10] sm:$0xff] }
 0x50f   : > { %v2174_v15 = vpop.eup %2173 }
 0x510   : > { %v1284_v16 = vsel %vm1103_vm3, %v2174_v15, 0.0 }
 0x511   : > { %1285 = vadd.xlane.f32.xlu1 %v1284_v16 }
 0x513   : > { %v2176_v17 = vpop.eup %2175 }
 0x514   : > { %v1287_v19 = vsel %vm1103_vm3, %v2176_v17, 0.0 }
 0x515   : > { %1288 = vadd.xlane.f32.xlu0 %v1287_v19  ;;  %v1458_v19 = vld [vmem:[%s2521_s6 + $0x8] sm:$0xff] }
 0x522   : > { %1174 = vrot.lane.b32.xlu1 %v2786_v42, %s2296_s3  ;;  %s3060_s3 = sld [smem:[#allocation27_spill]] (!%p1924_p1) }
 0x52b   : > { %1295 = vrot.lane.b32.xlu0 %v2786_v42, %s2297_s2  ;;  %v1354_v42 = vld [vmem:[%s3056_s29 + $0x8] sm:$0xff] }
 0x52c   : > { %v1357_v43 = vpack.c.bf16 %v1354_v42, %v1353_v41  ;;  %v1521_v41 = vld [vmem:[%s2531_s20 + $0x20] sm:$0xff]  ;;  %v1522_v42 = vld [vmem:[%s2531_s20 + $0x28] sm:$0xff] }
 0x52e   : > { %2044 = vmatpush3.bf16.msra.mxu1 %v1357_v43  ;;  %v1527_v43 = vpack.c.bf16 %v1522_v42, %v1521_v41 }
 0x52f   : > { %2057 = vmatprep.subr.bf16.mxu1 %v2291_v18 }
 0x592   : > { %v1165_v20 = vpop.xlane.xlu1 %1164 }
 0x593   : > { %2177 = vrcp.f32 %v1165_v20 }
 0x596   : > { %v1168_v21 = vpop.xlane.xlu0 %1167 }
 0x597   : > { %2179 = vrcp.f32 %v1168_v21 }
 0x59a   : > { %v1286_v22 = vpop.xlane.xlu1 %1285 }
 0x59b   : > { %2181 = vrcp.f32 %v1286_v22 }
 0x59e   : > { %v1175_v23 = vpop.permute.xlu1 %1174  ;;  %v1289_v24 = vpop.xlane.xlu0 %1288 }
 0x59f   : > { %2183 = vrcp.f32 %v1289_v24  ;;  %2024 = vmatpush3.bf16.msra.mxu0 %v1175_v23 }
 0x5a0   : > { %2035 = vmatprep.subr.bf16.mxu0 %v2291_v18  ;;  %v2178_v25 = vpop.eup %2177 }
 0x5a1   : > { %v1171_v27 = vmul.f32 %v2178_v25, %v2170_v11 }
 0x5a2   : > { %v1296_v30 = vpop.permute.xlu0 %1295 }
 0x5a4   : > { %v2180_v26 = vpop.eup %2179 }
 0x5a5   : > { %v1172_v28 = vmul.f32 %v2180_v26, %v2172_v13 }
 0x5a7   : > { %v1173_v29 = vpack.c.bf16 %v1172_v28, %v1171_v27 }
 0x5a8   : > { %v2182_v31 = vpop.eup %2181 }
 0x5a9   : > { %2026 = vmatmul.mubr.msk.bf16.vlgmr.msra.gmra.mxu0 %vm1103_vm3, %v1173_v29  ;;  %v1292_v33 = vmul.f32 %v2182_v31, %v2174_v15  ;;  %v1460_v15 = vld [vmem:[%s2521_s6 + $0x18] sm:$0xff]  ;;  %v1918_v29 = vld [vmem:[%s771_s19] ss:$0 sm:$0xff]  ;;  %s3062_s19 = sld [smem:[#allocation26_spill]] (!%p1924_p1) }
 0x5aa   : > { %2036 = vmatpush3.bf16.msra.mxu0 %v1296_v30  ;;  %2037 = vmatprep.mubr.msk.bf16.mxu0 %vm2292_vm2, %v2291_v18  ;;  %v1462_v16 = vpack.c.bf16 %v1460_v15, %v1459_v14 }
 0x5ab   : > { %2049 = vmatprep.subr.bf16.mxu0 %v2291_v18 }
 0x5ac   : > { %v2184_v32 = vpop.eup %2183 }
 0x5ad   : > { %v1293_v34 = vmul.f32 %v2184_v32, %v2176_v17  ;;  %v1457_v17 = vld [vmem:[%s2521_s6] sm:$0xff] }
 0x5ae   : > { %v1461_v20 = vpack.c.bf16 %v1458_v19, %v1457_v17 }
 0x5af   : > { %v1294_v35 = vpack.c.bf16 %v1293_v34, %v1292_v33  ;;  %v1919_v33 = vld [vmem:[%s774_s23] ss:$0 sm:$0xff] }
 0x5b1   : > { %2038 = vmatmul.mubr.msk.bf16.vlgmr.msra.gmra.mxu0 %vm1103_vm3, %v1294_v35 }
 0x5b2   : > { %2053 = vmatprep.mubr.msk.bf16.mxu0 %vm2292_vm2, %v2291_v18  ;;  %2050 = vmatpush3.bf16.msra.mxu0 %v1462_v16 }
 0x5b3   : > { %2051 = vmatprep.subr.bf16.mxu0 %v2291_v18 }
 0x5b6   : > { %2052 = vmatpush3.bf16.msra.mxu0 %v1461_v20 }
 0x669   : > { %v1214_v39 = vpop.f32.mrf.mxu0 }
 0x66b   : > { %v2027_v40 = vpop.f32.mrf.mxu0 }
 0x66d   : > { %v1217_v44 = vpop.f32.mrf.mxu0 }
 0x66f   : > { %v2028_v45 = vpop.f32.mrf.mxu0 }
 0x670   : > { %v1520_v45 = vld [vmem:[%s2531_s20 + $0x18] sm:$0xff] }
 0x671   : > { %v1335_v46 = vpop.f32.mrf.mxu0 }
 0x673   : > { %v2039_v47 = vpop.f32.mrf.mxu0 }
 0x674   : > { %v1517_v47 = vld [vmem:[%s2531_s20] sm:$0xff] }
 0x675   : > { %v1338_v48 = vpop.f32.mrf.mxu0 }
 0x676   : > { %v2160_v49 = vpack.i.bf16 %v1338_v48, %v1335_v46  ;;  %v1518_v48 = vld [vmem:[%s2531_s20 + $0x8] sm:$0xff] }
 0x677   : > { %v2040_v50 = vpop.f32.mrf.mxu0 }
 0x678   : > { %2161 = vrot.lane.b32.xlu1 %v2160_v49, %s2298_s25  ;;  %v1525_v49 = vpack.c.bf16 %v1518_v48, %v1517_v47  ;;  %v1920_v50 = vld [vmem:[%s3058_s16] ss:$0 sm:$0xff] }
 0x6ea   : > { %v2162_v51 = vpop.permute.xlu1 %2161 }
 0x6eb   : > { %v2164_v52 = vunpack.i.h.bf16 %v2162_v51  ;;  %v2163_v53 = vunpack.i.l.bf16 %v2162_v51 }
 0x6ed   : > { %v1351_v54 = vsel %vm1103_vm3, %v1217_v44, %v2164_v52  ;;  %v1350_v55 = vsel %vm1103_vm3, %v1214_v39, %v2163_v53  ;;  %v1524_v39 = vld [vmem:[%s2531_s20 + $0x38] sm:$0xff]  ;;  %v1519_v44 = vld [vmem:[%s2531_s20 + $0x10] sm:$0xff] }
 0x6ee   : > { %v1352_v56 = vpack.c.bf16 %v1351_v54, %v1350_v55  ;;  %v1528_v40 = vpack.c.bf16 %v1524_v39, %v1523_v38  ;;  %v1526_v46 = vpack.c.bf16 %v1520_v45, %v1519_v44 }
 0x6f0   : > { %2046 = vmatmul.mubr.msk.bf16.vlgmr.msra.gmra.mxu1 %vm1004_vm1, %v1352_v56 }
 0x6f1   : > { %2065 = vmatprep.mubr.msk.bf16.mxu1 %vm2292_vm2, %v2291_v18  ;;  %2058 = vmatpush3.bf16.msra.mxu1 %v1528_v40 }
 0x6f2   : > { %2059 = vmatprep.subr.bf16.mxu1 %v2291_v18 }
 0x6f5   : > { %2060 = vmatpush3.bf16.msra.mxu1 %v1527_v43 }
 0x6f6   : > { %2061 = vmatprep.subr.bf16.mxu1 %v2291_v18 }
 0x6f9   : > { %2062 = vmatpush3.bf16.msra.mxu1 %v1526_v46 }
 0x6fa   : > { %2063 = vmatprep.subr.bf16.mxu1 %v2291_v18  ;;  %v1922_v18 = vld [vmem:[%s3059_s0] ss:$0 sm:$0xff] }
 0x6fd   : > { %2064 = vmatpush3.bf16.msra.mxu1 %v1525_v49 }
 0x7b0   : > { %v1403_v58 = vpop.f32.mrf.mxu1 }
 0x7b1   : > { %v1404_v59 = vadd.f32 %v1916_v57, %v1403_v58 }
 0x7b2   : > { %v2047_v60 = vpop.f32.mrf.mxu1 }
 0x7b3   : > { %v2837_v61 = vadd.f32 %v1404_v59, %v2749_v1 }
 0x7b4   : > { %v1406_v62 = vpop.f32.mrf.mxu1 }
 0x7b5   : > { %v1407_v63 = vadd.f32 %v1916_v57, %v1406_v62  ;;  %v1414_v0 = vsel %vm1004_vm1, %v2837_v61, 0.0 }
 0x7b6   : > { %1415 = vadd.xlane.f32.xlu1 %v1414_v0  ;;  %v2048_v3 = vpop.f32.mrf.mxu1 }
 0x7b7   : > { %v2842_v4 = vadd.f32 %v1407_v63, %v2751_v2 }
 0x7b9   : > { %v1417_v5 = vsel %vm1004_vm1, %v2842_v4, 0.0 }
 0x7ba   : > { %1418 = vadd.xlane.f32.xlu0 %v1417_v5 }
 0x83f   : > { %v1416_v6 = vpop.xlane.xlu1 %1415 }
 0x840   : > { %v1420_v1 = vmul.f32 0.03125, %v1416_v6 }
 0x842   : > { %v1422_v7 = vsub.f32 %v2837_v61, %v1420_v1 }
 0x843   : > { %v1419_v8 = vpop.xlane.xlu0 %1418 }
 0x844   : > { %v1421_v9 = vmul.f32 0.03125, %v1419_v8  ;;  %v1424_v10 = vmul.f32 %v1422_v7, %v1422_v7 }
 0x846   : > { %v1423_v11 = vsub.f32 %v2842_v4, %v1421_v9  ;;  %v1426_v12 = vsel %vm1004_vm1, %v1424_v10, 0.0 }
 0x847   : > { %1427 = vadd.xlane.f32.xlu0 %v1426_v12 }
 0x848   : > { %v1425_v2 = vmul.f32 %v1423_v11, %v1423_v11 }
 0x84a   : > { %v1429_v13 = vsel %vm1004_vm1, %v1425_v2, 0.0 }
 0x84b   : > { %1430 = vadd.xlane.f32.xlu1 %v1429_v13 }
 0x8d0   : > { %v1428_v21 = vpop.xlane.xlu0 %1427 }
 0x8d1   : > { %v1432_v22 = vmul.f32 0.03125, %v1428_v21 }
 0x8d3   : > { %v1434_v23 = vadd.f32 1e-05, %v1432_v22 }
 0x8d4   : > { %v1431_v24 = vpop.xlane.xlu1 %1430 }
 0x8d5   : > { %2185 = vrsqrt.f32 %v1434_v23  ;;  %v1433_v25 = vmul.f32 0.03125, %v1431_v24 }
 0x8d7   : > { %v1435_v26 = vadd.f32 1e-05, %v1433_v25 }
 0x8d9   : > { %2187 = vrsqrt.f32 %v1435_v26 }
 0x8e2   : > { %v2186_v27 = vpop.eup %2185 }
 0x8e3   : > { %v1438_v28 = vmul.f32 %v2186_v27, %v1422_v7 }
 0x8e5   : > { %v1446_v32 = vmul.f32 %v1918_v29, %v1438_v28 }
 0x8e6   : > { %v2188_v30 = vpop.eup %2187 }
 0x8e7   : > { %v1439_v31 = vmul.f32 %v2188_v30, %v1423_v11  ;;  %v1454_v35 = vadd.f32 %v1919_v33, %v1446_v32 }
 0x8e9   : > { %v1447_v34 = vmul.f32 %v1918_v29, %v1439_v31 }
 0x8eb   : > { %v1455_v36 = vadd.f32 %v1919_v33, %v1447_v34 }
 0x8ed   : > { %v1456_v37 = vpack.c.bf16 %v1455_v36, %v1454_v35 }
 0x8ef   : > { %2054 = vmatmul.mubr.msk.bf16.vlgmr.msra.gmra.mxu0 %vm1004_vm1, %v1456_v37 }
 0x9af   : > { %v1507_v51 = vpop.f32.mrf.mxu0 }
 0x9b0   : > { %v1508_v52 = vadd.f32 %v1920_v50, %v1507_v51 }
 0x9b1   : > { %v2055_v53 = vpop.f32.mrf.mxu0 }
 0x9b2   : > { %2189 = vtanh.f32 %v1508_v52 }
 0x9b3   : > { %v1510_v54 = vpop.f32.mrf.mxu0 }
 0x9b4   : > { %v1511_v55 = vadd.f32 %v1920_v50, %v1510_v54 }
 0x9b5   : > { %v2056_v56 = vpop.f32.mrf.mxu0 }
 0x9b6   : > { %2191 = vtanh.f32 %v1511_v55 }
 0x9bf   : > { %v2190_v57 = vpop.eup %2189 }
 0x9c3   : > { %v2192_v58 = vpop.eup %2191 }
 0x9c4   : > { %v1516_v59 = vpack.c.bf16 %v2192_v58, %v2190_v57 }
 0x9c6   : > { %2066 = vmatmul.mubr.msk.bf16.vlgmr.msra.gmra.mxu1 %vm1536_vm4, %v1516_v59 }
 0xa86   : > { %v1574_v60 = vpop.f32.mrf.mxu1 }
 0xa87   : > { %v1575_v62 = vadd.f32 %v1922_v18, %v1574_v60 }
 0xa88   : > { %v2067_v63 = vpop.f32.mrf.mxu1 }
 0xa89   : > { %v1581_v0 = vadd.f32 %v1575_v62, %v2837_v61 }
 0xa8a   : > { %v1577_v3 = vpop.f32.mrf.mxu1 }
 0xa8b   : > { %1583 = vst.msk [vmem:[#allocation2] sm:$0xff] %vm1004_vm1, %v1581_v0  ;;  %v1578_v5 = vadd.f32 %v1922_v18, %v1577_v3  ;;  %1588 = sbr.rel (%p1924_p1) target bundleno = 3218 (0xc92), region = 104 }
 0xa8c   : > { %v2068_v6 = vpop.f32.mrf.mxu1 }
 0xa8d   : > { %v1582_v1 = vadd.f32 %v1578_v5, %v2842_v4 }
 0xa8f   : > { %1584 = vst.msk [vmem:[#allocation2 + $0x8] sm:$0xff] %vm1004_vm1, %v1582_v1 }
 0xa90   : > { %v1591_v7 = vsel %vm1004_vm1, %v1581_v0, 0.0  ;;  %v1594_v8 = vsel %vm1004_vm1, %v1582_v1, 0.0  ;;  %v1636_v16 = vld [vmem:[%s3060_s3 + $0x10] sm:$0xff]  ;;  %v1637_v17 = vld [vmem:[%s3060_s3 + $0x18] sm:$0xff]  ;;  %v1634_v19 = vld [vmem:[%s3060_s3] sm:$0xff]  ;;  %v2299_v20 = vmov 0.0  }
 0xa91   : > { %1592 = vadd.xlane.f32.xlu0 %v1591_v7  ;;  %2069 = vmatprep.subr.bf16.mxu0 %v2299_v20  ;;  %v1639_v21 = vpack.c.bf16 %v1637_v17, %v1636_v16  ;;  %v1635_v22 = vld [vmem:[%s3060_s3 + $0x8] sm:$0xff]  ;;  %vm2300_vm5 = vmmov 0   ;;  %v1925_v32 = vld [vmem:[%s3061_s7] ss:$0 sm:$0xff] }
 0xa92   : > { %2073 = vmatprep.mubr.msk.bf16.mxu0 %vm2300_vm5, %v2299_v20  ;;  %v1638_v23 = vpack.c.bf16 %v1635_v22, %v1634_v19  ;;  %v1926_v36 = vld [vmem:[%s3062_s19] ss:$0 sm:$0xff] }
 0xa93   : > { %2070 = vmatpush3.bf16.msra.mxu0 %v1639_v21  ;;  %v1927_v41 = vld [vmem:[%s3063_s17] ss:$0 sm:$0xff] }
 0xa94   : > { %2071 = vmatprep.subr.bf16.mxu0 %v2299_v20 }
 0xa95   : > { %1595 = vadd.xlane.f32.xlu0 %v1594_v8 }
 0xa97   : > { %2072 = vmatpush3.bf16.msra.mxu0 %v1638_v23 }
 0xb1a   : > { %v1593_v9 = vpop.xlane.xlu0 %1592 }
 0xb1b   : > { %v1597_v61 = vmul.f32 0.03125, %v1593_v9 }
 0xb1d   : > { %v1599_v10 = vsub.f32 %v1581_v0, %v1597_v61 }
 0xb1e   : > { %v1596_v11 = vpop.xlane.xlu0 %1595 }
 0xb1f   : > { %v1598_v12 = vmul.f32 0.03125, %v1596_v11  ;;  %v1601_v2 = vmul.f32 %v1599_v10, %v1599_v10 }
 0xb21   : > { %v1600_v13 = vsub.f32 %v1582_v1, %v1598_v12  ;;  %v1603_v4 = vsel %vm1004_vm1, %v1601_v2, 0.0 }
 0xb22   : > { %1604 = vadd.xlane.f32.xlu1 %v1603_v4 }
 0xb23   : > { %v1602_v14 = vmul.f32 %v1600_v13, %v1600_v13 }
 0xb25   : > { %v1606_v15 = vsel %vm1004_vm1, %v1602_v14, 0.0 }
 0xb26   : > { %1607 = vadd.xlane.f32.xlu1 %v1606_v15 }
 0xbab   : > { %v1605_v24 = vpop.xlane.xlu1 %1604 }
 0xbac   : > { %v1609_v25 = vmul.f32 0.03125, %v1605_v24 }
 0xbae   : > { %v1611_v26 = vadd.f32 1e-05, %v1609_v25 }
 0xbaf   : > { %v1608_v27 = vpop.xlane.xlu1 %1607 }
 0xbb0   : > { %2193 = vrsqrt.f32 %v1611_v26  ;;  %v1610_v28 = vmul.f32 0.03125, %v1608_v27 }
 0xbb2   : > { %v1612_v29 = vadd.f32 1e-05, %v1610_v28 }
 0xbb4   : > { %2195 = vrsqrt.f32 %v1612_v29 }
 0xbbd   : > { %v2194_v30 = vpop.eup %2193 }
 0xbbe   : > { %v1615_v31 = vmul.f32 %v2194_v30, %v1599_v10 }
 0xbc0   : > { %v1623_v35 = vmul.f32 %v1925_v32, %v1615_v31 }
 0xbc1   : > { %v2196_v33 = vpop.eup %2195 }
 0xbc2   : > { %v1616_v34 = vmul.f32 %v2196_v33, %v1600_v13  ;;  %v1631_v38 = vadd.f32 %v1926_v36, %v1623_v35 }
 0xbc4   : > { %v1624_v37 = vmul.f32 %v1925_v32, %v1616_v34 }
 0xbc6   : > { %v1632_v39 = vadd.f32 %v1926_v36, %v1624_v37 }
 0xbc8   : > { %v1633_v40 = vpack.c.bf16 %v1632_v39, %v1631_v38 }
 0xbca   : > { %2074 = vmatmul.mubr.msk.bf16.vlgmr.msra.gmra.mxu0 %vm1004_vm1, %v1633_v40 }
 0xc8a   : > { %v1684_v42 = vpop.f32.mrf.mxu0 }
 0xc8b   : > { %v1685_v43 = vadd.f32 %v1927_v41, %v1684_v42 }
 0xc8c   : > { %v2075_v44 = vpop.f32.mrf.mxu0 }
 0xc8d   : > { %1691 = vst.msk [vmem:[%s2537_s27] sm:$0xff] %vm1004_vm1, %v1685_v43 }
 0xc8e   : > { %v1687_v45 = vpop.f32.mrf.mxu0 }
 0xc8f   : > { %v1688_v46 = vadd.f32 %v1927_v41, %v1687_v45 }
 0xc90   : > { %v2076_v47 = vpop.f32.mrf.mxu0 }
 0xc91   : > { %1692 = vst.msk [vmem:[%s2537_s27 + $0x8] sm:$0xff] %vm1004_vm1, %v1688_v46 }
 0xc92 PF: > { %s3064_s0 = sld [smem:[#allocation9_spill]]  ;;  %s1707_s30 = sshll.u32 %s2537_s27, 4  ;;  %s2929_s30 = int_to_ptr.vmem [resolvable:$true] %s1707_s30 }
 0xc93   : > { %s3065_s21 = sld [smem:[#allocation7_spill]]  ;;  %s2197_s7 = scalar_lea.vmem %s2929_s30, 256 }
 0xc94   : > { %s3067_s15 = sld [smem:[#allocation29_spill]]  ;;  %p2198_p2 = scmp.ne.s32.totalorder %s2929_s30, %s2197_s7 }
 0xc95   : > { %s2301_s1 = smov [#allocation3]  }
 0xc96   : > { %p2199_p4 = pnand %p2198_p2, %p2453_p3  ;;  %s2201_s23 = sshll.u32 %s2301_s1, 4  ;;  %s2202_s23 = int_to_ptr.vmem [resolvable:$false] %s2201_s23 }
 0xc97   : > { %s2203_s19 = scalar_lea.vmem %s2202_s23, 512  ;;  %p2204_p6 = scmp.lt.s32.totalorder %s2929_s30, %s2202_s23 }
 0xc98   : > { %s1939_s2 = sshll.u32 %s3064_s0, 8  ;;  %p2200_p5 = pneg %p2199_p4 }
 0xc99   : > { %s3068_s6 = sand.u32 1, %s3065_s21   ;;  %p2205_p7 = scmp.lt.s32.totalorder %s2203_s19, %s2197_s7 }
 0xc9a   : > { %s2926_s22 = scalar_lea.hbm %s3067_s15, %s1939_s2  ;;  %s2933_s24 = scalar_lea.sflag [#allocation4], %s3068_s6 }
 0xc9b   : > { %p2206_p8 = por %p2205_p7, %p2204_p6 }
 0xc9d   : > { %p2207_p10 = pnand %p2206_p8, %p2200_p5 }
 0xc9f   : > { %2210 = shalt.err (!%p2207_p10)
}
 0xca0   : > { %s2211_s27 = scalar_lea.hbm %s2926_s22, 256  ;;  %s2215_s17 = scalar_lea.hbm %s3067_s15, 512 }
 0xca1   : > { %p2212_p11 = scmp.ne.s32.totalorder %s2926_s22, %s2211_s27  ;;  %p2216_p0 = scmp.lt.s32.totalorder %s2926_s22, %s3067_s15 }
 0xca2   : > { %p2217_p1 = scmp.lt.s32.totalorder %s2215_s17, %s2211_s27 }
 0xca3   : > { %p2213_p12 = pnand %p2212_p11, %p2453_p3 }
 0xca4   : > { %p2218_p2 = por %p2217_p1, %p2216_p0 }
 0xca5   : > { %p2214_p13 = pneg %p2213_p12 }
 0xca7   : > { %p2219_p4 = pnand %p2218_p2, %p2214_p13 }
 0xca9   : > { %2222 = shalt.err (!%p2219_p4)
}
 0xcaa   : > { %s2302_s2 = smov 128   ;;  %s2303_s29 = smov 8  }
 0xcab   : > { %2077 = dma.vmem_to_hbm [thread:$0]  (%p2453_p3), %s2929_s30, 256, %s2926_s22, %s2933_s24, %s2302_s2, %s2302_s2, %s2303_s29  }
 0xcac PF: > { %s3069_s25 = sld [smem:[#allocation12_spill]] }
 0xcad   : > { %s3070_s6 = sld [smem:[#allocation6_spill]] }
 0xcb2   : > { %p2083_p5 = scmp.ge.s32.totalorder %s3069_s25, 2 }
 0xcb3   : > { %s1722_s1 = sand.u32 1, %s3070_s6  }
 0xcb4   : > { %p2080_p6 = pnand %p2083_p5, %p2463_p9  ;;  %s1723_s23 = scalar_lea.sflag [#allocation4], %s1722_s1 }
 0xcb6   : > { %p2081_p7 = pneg %p2080_p6 }
 0xcb8   : > { %2256 = dma.done.wait (%p2081_p7), %s1723_s23, 256  }
 0xcb9   : > { %2258 = vsyncadd (%p2081_p7), %s1723_s23, 4294967040  ;;  %s32_s23 = sadd.s32 1, %s3069_s25   ;;  %s3072_s0 = sld [smem:[#allocation7_spill]] }
 0xcba   : > { %p29_p8 = scmp.ge.s32.totalorder %s32_s23, 6   ;;  %s3073_s30 = sld [smem:[#allocation8_spill]] }
 0xcbb   : > { %s3074_s20 = sld [smem:[#allocation17_spill]] }
 0xcbc   : > { %s3075_s21 = sld [smem:[#allocation10_spill]]  ;;  %31 = sbr.rel (!%p29_p8) target bundleno = 17 (0x11), region = 172 }
 0xcbd   : > { %s3076_s1 = sld [smem:[#allocation11_spill]] }
 0xcbe   : > { %s3077_s22 = sld [smem:[#allocation13_spill]] }
 0xcbf   : > { %s3078_s2 = sld [smem:[#allocation15_spill]] }
 0xcc1   :  { %1728 = vsyncpa [#allocation4], 1 }
 0xcc2   :  { %1730 = vsyncpa [#allocation4 + $0x1], 1 }

</bundles_post_ra>
